<compile_context>
chip_gen: v6e
topology: v6e:2x2x1
jax: 0.10.0
libtpu: 0.0.40
codegen_flags: <defaults>
</compile_context>

<pallas_src>
import functools

import jax
import jax.numpy as jnp
from jax.experimental import pallas as pl
from jax.experimental.pallas import tpu as pltpu

LANES = 128
SUBLANES = 8


def _round_up(x, m):
    return ((x + m - 1) // m) * m


def _pick_row_chunk(ho, target=8):
    """Largest divisor of `ho` that is <= target (bounds vreg live ranges)."""
    c = min(target, ho)
    while ho % c:
        c -= 1
    return c


def _vmem_bytes(block_shape_dtypes, scratch_shape_dtypes):
    """Rough scoped-VMEM estimate: (8,128)-padded, inputs/outputs 2x buffered."""
    def padded(shape, dtype):
        s = list(shape)
        if len(s) >= 1:
            s[-1] = _round_up(s[-1], LANES)
        if len(s) >= 2:
            s[-2] = _round_up(s[-2], SUBLANES)
        size = 1
        for v in s:
            size *= v
        return size * (jnp.finfo(dtype).bits // 8)

    total = sum(2 * padded(s, d) for s, d in block_shape_dtypes)
    total += sum(padded(s, d) for s, d in scratch_shape_dtypes)
    return total


# ---------------------------------------------------------------------------
# Fused kernel: 1x1 expand (+BN+ReLU6) -> 3x3 depthwise (+BN+ReLU6)
#               -> 1x1 project (+BN) (+ residual).
# One grid step = one batch element, whole image.  The hidden activation stays
# in VMEM for the whole step.
# ---------------------------------------------------------------------------
def _fused_block_kernel(*refs, has_expand, use_res, stride, h, w, ho, wo, cy,
                        mxu_dtype):
    if has_expand:
        (x_ref, we_ref, se_ref, be_ref,
         wdw_ref, sdw_ref, bdw_ref,
         wp_ref, sp_ref, bp_ref,
         o_ref, hid_ref) = refs
    else:
        (x_ref,
         wdw_ref, sdw_ref, bdw_ref,
         wp_ref, sp_ref, bp_ref,
         o_ref, hid_ref) = refs

    cin = x_ref.shape[-1]
    chid = wdw_ref.shape[-1]
    cout = wp_ref.shape[-1]

    # ---- 1x1 expand conv + BN + ReLU6: one whole-image MXU matmul (M = h*w) --
    if has_expand:
        xf = x_ref[0].reshape(h * w, cin).astype(mxu_dtype)
        hx = jnp.dot(xf, we_ref[...], preferred_element_type=jnp.float32)
        hx = jnp.clip(hx * se_ref[...] + be_ref[...], 0.0, 6.0)
        hid_ref[1:h + 1] = hx.reshape(h, w, chid)
    else:
        hid_ref[1:h + 1] = x_ref[0].astype(jnp.float32)

    # True-zero halo rows for the 3x3 depthwise (aligned leading-axis stores;
    # the expand is only computed on real rows, so no bias/ReLU6 leakage).
    zrow = jnp.zeros((1, w, chid), jnp.float32)
    hid_ref[0:1] = zrow
    hid_ref[h + 1:h + 2] = zrow

    wdw = wdw_ref[...]                                   # (9, chid), read once
    col = jax.lax.broadcasted_iota(jnp.int32, (1, w, 1), 1)

    # ---- depthwise 3x3 + BN + ReLU6 -> 1x1 project + BN (+res), row chunks --
    # Each chunk's tap operands are re-read from the VMEM scratch (leading-axis
    # slices) so vreg live ranges stay bounded; W shifts are XLU rolls.
    for c in range(ho // cy):
        y0 = c * cy
        acc = jnp.zeros((cy, w, chid), jnp.float32)
        for ky in range(3):
            r0 = stride * y0 + ky
            if stride == 1:
                rows = hid_ref[r0:r0 + cy]
            else:
                # Only the rows feeding stride-2 outputs (cheap leading-axis
                # subsample of the loaded slab).
                rows = hid_ref[r0:r0 + stride * (cy - 1) + 1][::stride]
            # W halo via XLU sublane rotation (np.roll semantics) + mask of the
            # wrapped column; no misaligned sublane slices, no W-halo scratch.
            left = jnp.where(col >= 1,
                             pltpu.roll(rows, shift=1, axis=1), 0.0)
            right = jnp.where(col <= w - 2,
                              pltpu.roll(rows, shift=w - 1, axis=1), 0.0)
            acc = acc + left * wdw[3 * ky + 0:3 * ky + 1, :]
            acc = acc + rows * wdw[3 * ky + 1:3 * ky + 2, :]
            acc = acc + right * wdw[3 * ky + 2:3 * ky + 3, :]
        d = jnp.clip(acc * sdw_ref[...] + bdw_ref[...], 0.0, 6.0)
        if stride != 1:
            # TODO(synk): at production widths build the stride-2 tap operands
            # with strided column reads from the scratch instead of this
            # post-hoc W subsample of the stride-1 result.
            d = d[:, ::stride, :]

        y = jnp.dot(d.reshape(cy * wo, chid).astype(mxu_dtype), wp_ref[...],
                    preferred_element_type=jnp.float32)
        y = y * sp_ref[...] + bp_ref[...]
        if use_res:
            # stride == 1 and cin == cout here; residual rows read straight
            # from the resident x block (no separate residual stream).
            y = y + x_ref[0, y0:y0 + cy].reshape(cy * w, cin).astype(jnp.float32)
        o_ref[0, y0:y0 + cy] = y.reshape(cy, wo, cout).astype(o_ref.dtype)


# ---------------------------------------------------------------------------
# NHWC entry point (the inter-block format a full network should use).
# ---------------------------------------------------------------------------
def inverted_residual_forward_nhwc(x, params, *, stride, use_res_connect,
                                   mxu_dtype=jnp.float32):
    assert stride in (1, 2)
    n, h, w, cin = x.shape
    has_expand = "w_expand" in params
    chid = params["w_dw"].shape[-1]
    cout = params["w_proj"].shape[1]
    if use_res_connect:
        assert stride == 1 and cin == cout

    ho = (h - 1) // stride + 1
    wo = (w - 1) // stride + 1
    cy = _pick_row_chunk(ho)

    # Tiny weight reshapes / dtype casts only (no activation padding/stacking).
    w_dw = params["w_dw"].reshape(9, chid)
    s_dw = params["s_dw"].reshape(1, chid)
    b_dw = params["b_dw"].reshape(1, chid)
    w_pr = params["w_proj"].astype(mxu_dtype)
    s_pr = params["s_proj"].reshape(1, cout)
    b_pr = params["b_proj"].reshape(1, cout)

    args = [x]
    in_specs = [pl.BlockSpec((1, h, w, cin), lambda b: (b, 0, 0, 0))]
    blocks = [((1, h, w, cin), x.dtype)]
    if has_expand:
        args += [params["w_expand"].astype(mxu_dtype),
                 params["s_expand"].reshape(1, chid),
                 params["b_expand"].reshape(1, chid)]
        in_specs += [pl.BlockSpec((cin, chid), lambda b: (0, 0)),
                     pl.BlockSpec((1, chid), lambda b: (0, 0)),
                     pl.BlockSpec((1, chid), lambda b: (0, 0))]
        blocks += [((cin, chid), mxu_dtype), ((1, chid), jnp.float32),
                   ((1, chid), jnp.float32)]
    args += [w_dw, s_dw, b_dw, w_pr, s_pr, b_pr]
    in_specs += [pl.BlockSpec((9, chid), lambda b: (0, 0)),
                 pl.BlockSpec((1, chid), lambda b: (0, 0)),
                 pl.BlockSpec((1, chid), lambda b: (0, 0)),
                 pl.BlockSpec((chid, cout), lambda b: (0, 0)),
                 pl.BlockSpec((1, cout), lambda b: (0, 0)),
                 pl.BlockSpec((1, cout), lambda b: (0, 0))]
    blocks += [((9, chid), jnp.float32), ((1, chid), jnp.float32),
               ((1, chid), jnp.float32), ((chid, cout), mxu_dtype),
               ((1, cout), jnp.float32), ((1, cout), jnp.float32),
               ((1, ho, wo, cout), x.dtype)]          # output block

    scratch_shape = (h + 2, w, chid)
    est = _vmem_bytes(blocks, [(scratch_shape, jnp.float32)])
    vmem_limit = int(min(32 * 2 ** 20, max(8 * 2 ** 20, 4 * est)))

    kernel = functools.partial(
        _fused_block_kernel, has_expand=has_expand, use_res=use_res_connect,
        stride=stride, h=h, w=w, ho=ho, wo=wo, cy=cy, mxu_dtype=mxu_dtype)

    return pl.pallas_call(
        kernel,
        out_shape=jax.ShapeDtypeStruct((n, ho, wo, cout), x.dtype),
        grid=(n,),
        in_specs=in_specs,
        out_specs=pl.BlockSpec((1, ho, wo, cout), lambda b: (b, 0, 0, 0)),
        scratch_shapes=[pltpu.VMEM(scratch_shape, jnp.float32)],
        compiler_params=pltpu.CompilerParams(
            dimension_semantics=("parallel",),
            vmem_limit_bytes=vmem_limit),
    )(*args)


# ---------------------------------------------------------------------------
# NCHW wrapper matching the PyTorch module interface.  In a full MobileNetV2
# these two transposes disappear by keeping NHWC between blocks (use the
# *_nhwc entry point).
# ---------------------------------------------------------------------------
def inverted_residual_forward(x_nchw, params, *, stride, use_res_connect,
                              mxu_dtype=jnp.float32):
    x = jnp.transpose(x_nchw, (0, 2, 3, 1))            # NCHW -> NHWC
    y = inverted_residual_forward_nhwc(
        x, params, stride=stride, use_res_connect=use_res_connect,
        mxu_dtype=mxu_dtype)
    return jnp.transpose(y, (0, 3, 1, 2))              # NHWC -> NCHW


# ---------------------------------------------------------------------------
# Deterministic parameter construction (BN folded into scale/bias).
# ---------------------------------------------------------------------------
def make_params(key, inp, outp, expand_ratio, dtype=jnp.float32):
    hidden = int(round(inp * expand_ratio))
    eps = 1e-5
    keys = jax.random.split(key, 16)
    ki = iter(range(16))

    def bn_fold(c):
        gamma = 1.0 + 0.1 * jax.random.normal(keys[next(ki)], (c,), dtype)
        beta = 0.1 * jax.random.normal(keys[next(ki)], (c,), dtype)
        mean = 0.1 * jax.random.normal(keys[next(ki)], (c,), dtype)
        var = jax.nn.softplus(jax.random.normal(keys[next(ki)], (c,), dtype)) + 0.5
        scale = gamma / jnp.sqrt(var + eps)
        bias = beta - mean * scale
        return scale, bias

    params = {}
    if expand_ratio != 1:
        params["w_expand"] = 0.3 * jax.random.normal(keys[next(ki)], (inp, hidden), dtype)
        params["s_expand"], params["b_expand"] = bn_fold(hidden)
    dw_c = hidden if expand_ratio != 1 else inp
    params["w_dw"] = 0.3 * jax.random.normal(keys[next(ki)], (3, 3, dw_c), dtype)
    params["s_dw"], params["b_dw"] = bn_fold(dw_c)
    params["w_proj"] = 0.3 * jax.random.normal(keys[next(ki)], (dw_c, outp), dtype)
    params["s_proj"], params["b_proj"] = bn_fold(outp)
    return params


# ---------------------------------------------------------------------------
# Pure-JAX reference (eval-mode BN folded), NCHW in / NCHW out.
# ---------------------------------------------------------------------------
def ref_forward(x_nchw, params, *, stride, use_res_connect):
    x = jnp.transpose(x_nchw, (0, 2, 3, 1))
    y = x
    if "w_expand" in params:
        y = jnp.einsum("nhwc,cd->nhwd", y, params["w_expand"])
        y = jnp.clip(y * params["s_expand"] + params["b_expand"], 0.0, 6.0)
    c = y.shape[-1]
    y = jax.lax.conv_general_dilated(
        y, params["w_dw"].reshape(3, 3, 1, c),
        window_strides=(stride, stride), padding=((1, 1), (1, 1)),
        dimension_numbers=("NHWC", "HWIO", "NHWC"),
        feature_group_count=c,
    )
    y = jnp.clip(y * params["s_dw"] + params["b_dw"], 0.0, 6.0)
    y = jnp.einsum("nhwc,cd->nhwd", y, params["w_proj"])
    y = y * params["s_proj"] + params["b_proj"]
    if use_res_connect:
        y = y + x
    return jnp.transpose(y, (0, 3, 1, 2))


if __name__ == "__main__":
    key = jax.random.PRNGKey(0)
    N, H, W = 2, 16, 16

    # (inp, outp, stride, expand_ratio): residual branch, stride-2 branch,
    # expand_ratio == 1 branch.
    configs = [(8, 8, 1, 6), (8, 16, 2, 6), (8, 8, 1, 1)]
    for i, (inp, outp, stride, er) in enumerate(configs):
        kx, kp = jax.random.split(jax.random.fold_in(key, i))
        x = jax.random.normal(kx, (N, inp, H, W), jnp.float32)   # NCHW like PyTorch
        params = make_params(kp, inp, outp, er)
        use_res = (stride == 1 and inp == outp)

        out = inverted_residual_forward(
            x, params, stride=stride, use_res_connect=use_res)
        out = jax.block_until_ready(out)

        ref = ref_forward(x, params, stride=stride, use_res_connect=use_res)
        ho = (H - 1) // stride + 1
        wo = (W - 1) // stride + 1
        assert out.shape == (N, outp, ho, wo), out.shape
        max_err = float(jnp.max(jnp.abs(out - ref)))
        assert max_err < 1e-3, f"config {(inp, outp, stride, er)}: mismatch {max_err}"

    # bf16 MXU-input mode (f32 accumulation + f32 epilogues), looser tolerance.
    inp, outp, stride, er = configs[0]
    kx, kp = jax.random.split(jax.random.fold_in(key, 0))
    x = jax.random.normal(kx, (N, inp, H, W), jnp.float32)
    params = make_params(kp, inp, outp, er)
    out_bf = inverted_residual_forward(
        x, params, stride=stride, use_res_connect=True, mxu_dtype=jnp.bfloat16)
    out_bf = jax.block_until_ready(out_bf)
    ref = ref_forward(x, params, stride=stride, use_res_connect=True)
    scale = float(jnp.max(jnp.abs(ref))) + 1e-6
    err = float(jnp.max(jnp.abs(out_bf - ref)))
    assert err < 5e-2 * scale, f"bf16 mode mismatch {err} (scale {scale})"

    print("KERNEL_OK")
</pallas_src>

<mosaic_0001>
module attributes {stable_mosaic.version = 11 : i64} {
  func.func @_fused_block_kernel(%arg0: i32, %arg1: memref<1x16x16x8xf32, #tpu.memory_space<vmem>>, %arg2: memref<8x48xf32, #tpu.memory_space<vmem>>, %arg3: memref<1x48xf32, #tpu.memory_space<vmem>>, %arg4: memref<1x48xf32, #tpu.memory_space<vmem>>, %arg5: memref<9x48xf32, #tpu.memory_space<vmem>>, %arg6: memref<1x48xf32, #tpu.memory_space<vmem>>, %arg7: memref<1x48xf32, #tpu.memory_space<vmem>>, %arg8: memref<48x8xf32, #tpu.memory_space<vmem>>, %arg9: memref<1x8xf32, #tpu.memory_space<vmem>>, %arg10: memref<1x8xf32, #tpu.memory_space<vmem>>, %arg11: memref<1x16x16x8xf32, #tpu.memory_space<vmem>>, %arg12: memref<18x16x48xf32, #tpu.memory_space<vmem>>) attributes {dimension_semantics = [#tpu.dimension_semantics<parallel>], iteration_bounds = array<i64: 2>, scalar_prefetch = 0 : i64, scratch_operands = 1 : i64, tpu.core_type = #tpu.core_type<tc>, window_params = [{transform_indices = @transform_0, window_bounds = array<i64: 1, 16, 16, 8>}, {pipeline_mode = #tpu.pipeline_mode<synchronous>, transform_indices = @transform_1, window_bounds = array<i64: 8, 48>}, {pipeline_mode = #tpu.pipeline_mode<synchronous>, transform_indices = @transform_2, window_bounds = array<i64: 1, 48>}, {pipeline_mode = #tpu.pipeline_mode<synchronous>, transform_indices = @transform_3, window_bounds = array<i64: 1, 48>}, {pipeline_mode = #tpu.pipeline_mode<synchronous>, transform_indices = @transform_4, window_bounds = array<i64: 9, 48>}, {pipeline_mode = #tpu.pipeline_mode<synchronous>, transform_indices = @transform_5, window_bounds = array<i64: 1, 48>}, {pipeline_mode = #tpu.pipeline_mode<synchronous>, transform_indices = @transform_6, window_bounds = array<i64: 1, 48>}, {pipeline_mode = #tpu.pipeline_mode<synchronous>, transform_indices = @transform_7, window_bounds = array<i64: 48, 8>}, {pipeline_mode = #tpu.pipeline_mode<synchronous>, transform_indices = @transform_8, window_bounds = array<i64: 1, 8>}, {pipeline_mode = #tpu.pipeline_mode<synchronous>, transform_indices = @transform_9, window_bounds = array<i64: 1, 8>}, {transform_indices = @transform_10, window_bounds = array<i64: 1, 16, 16, 8>}]} {
    %c0 = arith.constant 0 : index
    %c0_0 = arith.constant 0 : index
    %c0_1 = arith.constant 0 : index
    %c0_2 = arith.constant 0 : index
    %0 = vector.load %arg1[%c0, %c0_0, %c0_1, %c0_2] : memref<1x16x16x8xf32, #tpu.memory_space<vmem>>, vector<1x16x16x8xf32>
    %1 = vector.shape_cast %0 : vector<1x16x16x8xf32> to vector<16x16x8xf32>
    %2 = vector.shape_cast %1 : vector<16x16x8xf32> to vector<256x8xf32>
    %c0_3 = arith.constant 0 : index
    %c0_4 = arith.constant 0 : index
    %3 = vector.load %arg2[%c0_3, %c0_4] : memref<8x48xf32, #tpu.memory_space<vmem>>, vector<8x48xf32>
    %cst = arith.constant dense<0.000000e+00> : vector<256x48xf32>
    %4 = tpu.matmul %2, %3, %cst {dimension_numbers = #tpu.dot_dimension_numbers<[1], [0], [0], [1], [0, 0, 1, 1], [], []>} : vector<256x8xf32>, vector<8x48xf32>, vector<256x48xf32> -> vector<256x48xf32>
    %c0_5 = arith.constant 0 : index
    %c0_6 = arith.constant 0 : index
    %5 = vector.load %arg3[%c0_5, %c0_6] : memref<1x48xf32, #tpu.memory_space<vmem>>, vector<1x48xf32>
    %6 = vector.broadcast %5 : vector<1x48xf32> to vector<256x48xf32>
    %7 = arith.mulf %4, %6 : vector<256x48xf32>
    %c0_7 = arith.constant 0 : index
    %c0_8 = arith.constant 0 : index
    %8 = vector.load %arg4[%c0_7, %c0_8] : memref<1x48xf32, #tpu.memory_space<vmem>>, vector<1x48xf32>
    %9 = vector.broadcast %8 : vector<1x48xf32> to vector<256x48xf32>
    %10 = arith.addf %7, %9 : vector<256x48xf32>
    %cst_9 = arith.constant 0.000000e+00 : f32
    %cst_10 = arith.constant 6.000000e+00 : f32
    %11 = vector.broadcast %cst_9 : f32 to vector<256x48xf32>
    %12 = arith.maximumf %11, %10 : vector<256x48xf32>
    %13 = vector.broadcast %cst_10 : f32 to vector<256x48xf32>
    %14 = arith.minimumf %13, %12 : vector<256x48xf32>
    %15 = vector.shape_cast %14 : vector<256x48xf32> to vector<16x16x48xf32>
    %c1 = arith.constant 1 : index
    %c0_11 = arith.constant 0 : index
    %c0_12 = arith.constant 0 : index
    %16 = vector.load %arg12[%c1, %c0_11, %c0_12] : memref<18x16x48xf32, #tpu.memory_space<vmem>>, vector<16x16x48xf32>
    tpu.vector_store %arg12[%c1, %c0_11, %c0_12], %15 {strides = array<i32>} : memref<18x16x48xf32, #tpu.memory_space<vmem>>, vector<16x16x48xf32>,
    %cst_13 = arith.constant 0.000000e+00 : f32
    %17 = vector.broadcast %cst_13 : f32 to vector<1x16x48xf32>
    %c0_14 = arith.constant 0 : index
    %c0_15 = arith.constant 0 : index
    %c0_16 = arith.constant 0 : index
    %18 = vector.load %arg12[%c0_14, %c0_15, %c0_16] : memref<18x16x48xf32, #tpu.memory_space<vmem>>, vector<1x16x48xf32>
    tpu.vector_store %arg12[%c0_14, %c0_15, %c0_16], %17 {strides = array<i32>} : memref<18x16x48xf32, #tpu.memory_space<vmem>>, vector<1x16x48xf32>,
    %c17 = arith.constant 17 : index
    %c0_17 = arith.constant 0 : index
    %c0_18 = arith.constant 0 : index
    %19 = vector.load %arg12[%c17, %c0_17, %c0_18] : memref<18x16x48xf32, #tpu.memory_space<vmem>>, vector<1x16x48xf32>
    tpu.vector_store %arg12[%c17, %c0_17, %c0_18], %17 {strides = array<i32>} : memref<18x16x48xf32, #tpu.memory_space<vmem>>, vector<1x16x48xf32>,
    %c0_19 = arith.constant 0 : index
    %c0_20 = arith.constant 0 : index
    %20 = vector.load %arg5[%c0_19, %c0_20] : memref<9x48xf32, #tpu.memory_space<vmem>>, vector<9x48xf32>
    %21 = tpu.iota {dimensions = array<i32: 1>} : vector<1x16x1xi32>
    %cst_21 = arith.constant 0.000000e+00 : f32
    %22 = vector.broadcast %cst_21 : f32 to vector<8x16x48xf32>
    %c0_22 = arith.constant 0 : index
    %c0_23 = arith.constant 0 : index
    %c0_24 = arith.constant 0 : index
    %23 = vector.load %arg12[%c0_22, %c0_23, %c0_24] : memref<18x16x48xf32, #tpu.memory_space<vmem>>, vector<8x16x48xf32>
    %c1_i32 = arith.constant 1 : i32
    %24 = vector.broadcast %c1_i32 : i32 to vector<1x16x1xi32>
    %25 = arith.cmpi sge, %21, %24 : vector<1x16x1xi32>
    %c1_i32_25 = arith.constant 1 : i32
    %26 = tpu.dynamic_rotate %23 by %c1_i32_25 dim 1 : vector<8x16x48xf32>, i32 -> vector<8x16x48xf32>
    %cst_26 = arith.constant 0.000000e+00 : f32
    %27 = vector.shape_cast %25 : vector<1x16x1xi1> to vector<1x16x1xi1>
    %28 = vector.broadcast %27 : vector<1x16x1xi1> to vector<8x16x48xi1>
    %29 = vector.broadcast %cst_26 : f32 to vector<8x16x48xf32>
    %30 = arith.select %28, %26, %29 : vector<8x16x48xi1>, vector<8x16x48xf32>
    %c14_i32 = arith.constant 14 : i32
    %31 = vector.broadcast %c14_i32 : i32 to vector<1x16x1xi32>
    %32 = arith.cmpi sle, %21, %31 : vector<1x16x1xi32>
    %c15_i32 = arith.constant 15 : i32
    %33 = tpu.dynamic_rotate %23 by %c15_i32 dim 1 : vector<8x16x48xf32>, i32 -> vector<8x16x48xf32>
    %cst_27 = arith.constant 0.000000e+00 : f32
    %34 = vector.shape_cast %32 : vector<1x16x1xi1> to vector<1x16x1xi1>
    %35 = vector.broadcast %34 : vector<1x16x1xi1> to vector<8x16x48xi1>
    %36 = vector.broadcast %cst_27 : f32 to vector<8x16x48xf32>
    %37 = arith.select %35, %33, %36 : vector<8x16x48xi1>, vector<8x16x48xf32>
    %38 = vector.extract_strided_slice %20 {offsets = [0, 0], sizes = [1, 48], strides = [1, 1]} : vector<9x48xf32> to vector<1x48xf32>
    %39 = vector.shape_cast %38 : vector<1x48xf32> to vector<1x1x48xf32>
    %40 = vector.broadcast %39 : vector<1x1x48xf32> to vector<8x16x48xf32>
    %41 = arith.mulf %30, %40 : vector<8x16x48xf32>
    %42 = arith.addf %22, %41 : vector<8x16x48xf32>
    %43 = vector.extract_strided_slice %20 {offsets = [1, 0], sizes = [1, 48], strides = [1, 1]} : vector<9x48xf32> to vector<1x48xf32>
    %44 = vector.shape_cast %43 : vector<1x48xf32> to vector<1x1x48xf32>
    %45 = vector.broadcast %44 : vector<1x1x48xf32> to vector<8x16x48xf32>
    %46 = arith.mulf %23, %45 : vector<8x16x48xf32>
    %47 = arith.addf %42, %46 : vector<8x16x48xf32>
    %48 = vector.extract_strided_slice %20 {offsets = [2, 0], sizes = [1, 48], strides = [1, 1]} : vector<9x48xf32> to vector<1x48xf32>
    %49 = vector.shape_cast %48 : vector<1x48xf32> to vector<1x1x48xf32>
    %50 = vector.broadcast %49 : vector<1x1x48xf32> to vector<8x16x48xf32>
    %51 = arith.mulf %37, %50 : vector<8x16x48xf32>
    %52 = arith.addf %47, %51 : vector<8x16x48xf32>
    %c1_28 = arith.constant 1 : index
    %c0_29 = arith.constant 0 : index
    %c0_30 = arith.constant 0 : index
    %53 = vector.load %arg12[%c1_28, %c0_29, %c0_30] : memref<18x16x48xf32, #tpu.memory_space<vmem>>, vector<8x16x48xf32>
    %c1_i32_31 = arith.constant 1 : i32
    %54 = vector.broadcast %c1_i32_31 : i32 to vector<1x16x1xi32>
    %55 = arith.cmpi sge, %21, %54 : vector<1x16x1xi32>
    %c1_i32_32 = arith.constant 1 : i32
    %56 = tpu.dynamic_rotate %53 by %c1_i32_32 dim 1 : vector<8x16x48xf32>, i32 -> vector<8x16x48xf32>
    %cst_33 = arith.constant 0.000000e+00 : f32
    %57 = vector.shape_cast %55 : vector<1x16x1xi1> to vector<1x16x1xi1>
    %58 = vector.broadcast %57 : vector<1x16x1xi1> to vector<8x16x48xi1>
    %59 = vector.broadcast %cst_33 : f32 to vector<8x16x48xf32>
    %60 = arith.select %58, %56, %59 : vector<8x16x48xi1>, vector<8x16x48xf32>
    %c14_i32_34 = arith.constant 14 : i32
    %61 = vector.broadcast %c14_i32_34 : i32 to vector<1x16x1xi32>
    %62 = arith.cmpi sle, %21, %61 : vector<1x16x1xi32>
    %c15_i32_35 = arith.constant 15 : i32
    %63 = tpu.dynamic_rotate %53 by %c15_i32_35 dim 1 : vector<8x16x48xf32>, i32 -> vector<8x16x48xf32>
    %cst_36 = arith.constant 0.000000e+00 : f32
    %64 = vector.shape_cast %62 : vector<1x16x1xi1> to vector<1x16x1xi1>
    %65 = vector.broadcast %64 : vector<1x16x1xi1> to vector<8x16x48xi1>
    %66 = vector.broadcast %cst_36 : f32 to vector<8x16x48xf32>
    %67 = arith.select %65, %63, %66 : vector<8x16x48xi1>, vector<8x16x48xf32>
    %68 = vector.extract_strided_slice %20 {offsets = [3, 0], sizes = [1, 48], strides = [1, 1]} : vector<9x48xf32> to vector<1x48xf32>
    %69 = vector.shape_cast %68 : vector<1x48xf32> to vector<1x1x48xf32>
    %70 = vector.broadcast %69 : vector<1x1x48xf32> to vector<8x16x48xf32>
    %71 = arith.mulf %60, %70 : vector<8x16x48xf32>
    %72 = arith.addf %52, %71 : vector<8x16x48xf32>
    %73 = vector.extract_strided_slice %20 {offsets = [4, 0], sizes = [1, 48], strides = [1, 1]} : vector<9x48xf32> to vector<1x48xf32>
    %74 = vector.shape_cast %73 : vector<1x48xf32> to vector<1x1x48xf32>
    %75 = vector.broadcast %74 : vector<1x1x48xf32> to vector<8x16x48xf32>
    %76 = arith.mulf %53, %75 : vector<8x16x48xf32>
    %77 = arith.addf %72, %76 : vector<8x16x48xf32>
    %78 = vector.extract_strided_slice %20 {offsets = [5, 0], sizes = [1, 48], strides = [1, 1]} : vector<9x48xf32> to vector<1x48xf32>
    %79 = vector.shape_cast %78 : vector<1x48xf32> to vector<1x1x48xf32>
    %80 = vector.broadcast %79 : vector<1x1x48xf32> to vector<8x16x48xf32>
    %81 = arith.mulf %67, %80 : vector<8x16x48xf32>
    %82 = arith.addf %77, %81 : vector<8x16x48xf32>
    %c2 = arith.constant 2 : index
    %c0_37 = arith.constant 0 : index
    %c0_38 = arith.constant 0 : index
    %83 = vector.load %arg12[%c2, %c0_37, %c0_38] : memref<18x16x48xf32, #tpu.memory_space<vmem>>, vector<8x16x48xf32>
    %c1_i32_39 = arith.constant 1 : i32
    %84 = vector.broadcast %c1_i32_39 : i32 to vector<1x16x1xi32>
    %85 = arith.cmpi sge, %21, %84 : vector<1x16x1xi32>
    %c1_i32_40 = arith.constant 1 : i32
    %86 = tpu.dynamic_rotate %83 by %c1_i32_40 dim 1 : vector<8x16x48xf32>, i32 -> vector<8x16x48xf32>
    %cst_41 = arith.constant 0.000000e+00 : f32
    %87 = vector.shape_cast %85 : vector<1x16x1xi1> to vector<1x16x1xi1>
    %88 = vector.broadcast %87 : vector<1x16x1xi1> to vector<8x16x48xi1>
    %89 = vector.broadcast %cst_41 : f32 to vector<8x16x48xf32>
    %90 = arith.select %88, %86, %89 : vector<8x16x48xi1>, vector<8x16x48xf32>
    %c14_i32_42 = arith.constant 14 : i32
    %91 = vector.broadcast %c14_i32_42 : i32 to vector<1x16x1xi32>
    %92 = arith.cmpi sle, %21, %91 : vector<1x16x1xi32>
    %c15_i32_43 = arith.constant 15 : i32
    %93 = tpu.dynamic_rotate %83 by %c15_i32_43 dim 1 : vector<8x16x48xf32>, i32 -> vector<8x16x48xf32>
    %cst_44 = arith.constant 0.000000e+00 : f32
    %94 = vector.shape_cast %92 : vector<1x16x1xi1> to vector<1x16x1xi1>
    %95 = vector.broadcast %94 : vector<1x16x1xi1> to vector<8x16x48xi1>
    %96 = vector.broadcast %cst_44 : f32 to vector<8x16x48xf32>
    %97 = arith.select %95, %93, %96 : vector<8x16x48xi1>, vector<8x16x48xf32>
    %98 = vector.extract_strided_slice %20 {offsets = [6, 0], sizes = [1, 48], strides = [1, 1]} : vector<9x48xf32> to vector<1x48xf32>
    %99 = vector.shape_cast %98 : vector<1x48xf32> to vector<1x1x48xf32>
    %100 = vector.broadcast %99 : vector<1x1x48xf32> to vector<8x16x48xf32>
    %101 = arith.mulf %90, %100 : vector<8x16x48xf32>
    %102 = arith.addf %82, %101 : vector<8x16x48xf32>
    %103 = vector.extract_strided_slice %20 {offsets = [7, 0], sizes = [1, 48], strides = [1, 1]} : vector<9x48xf32> to vector<1x48xf32>
    %104 = vector.shape_cast %103 : vector<1x48xf32> to vector<1x1x48xf32>
    %105 = vector.broadcast %104 : vector<1x1x48xf32> to vector<8x16x48xf32>
    %106 = arith.mulf %83, %105 : vector<8x16x48xf32>
    %107 = arith.addf %102, %106 : vector<8x16x48xf32>
    %108 = vector.extract_strided_slice %20 {offsets = [8, 0], sizes = [1, 48], strides = [1, 1]} : vector<9x48xf32> to vector<1x48xf32>
    %109 = vector.shape_cast %108 : vector<1x48xf32> to vector<1x1x48xf32>
    %110 = vector.broadcast %109 : vector<1x1x48xf32> to vector<8x16x48xf32>
    %111 = arith.mulf %97, %110 : vector<8x16x48xf32>
    %112 = arith.addf %107, %111 : vector<8x16x48xf32>
    %c0_45 = arith.constant 0 : index
    %c0_46 = arith.constant 0 : index
    %113 = vector.load %arg6[%c0_45, %c0_46] : memref<1x48xf32, #tpu.memory_space<vmem>>, vector<1x48xf32>
    %114 = vector.shape_cast %113 : vector<1x48xf32> to vector<1x1x48xf32>
    %115 = vector.broadcast %114 : vector<1x1x48xf32> to vector<8x16x48xf32>
    %116 = arith.mulf %112, %115 : vector<8x16x48xf32>
    %c0_47 = arith.constant 0 : index
    %c0_48 = arith.constant 0 : index
    %117 = vector.load %arg7[%c0_47, %c0_48] : memref<1x48xf32, #tpu.memory_space<vmem>>, vector<1x48xf32>
    %118 = vector.shape_cast %117 : vector<1x48xf32> to vector<1x1x48xf32>
    %119 = vector.broadcast %118 : vector<1x1x48xf32> to vector<8x16x48xf32>
    %120 = arith.addf %116, %119 : vector<8x16x48xf32>
    %cst_49 = arith.constant 0.000000e+00 : f32
    %cst_50 = arith.constant 6.000000e+00 : f32
    %121 = vector.broadcast %cst_49 : f32 to vector<8x16x48xf32>
    %122 = arith.maximumf %121, %120 : vector<8x16x48xf32>
    %123 = vector.broadcast %cst_50 : f32 to vector<8x16x48xf32>
    %124 = arith.minimumf %123, %122 : vector<8x16x48xf32>
    %125 = vector.shape_cast %124 : vector<8x16x48xf32> to vector<128x48xf32>
    %c0_51 = arith.constant 0 : index
    %c0_52 = arith.constant 0 : index
    %126 = vector.load %arg8[%c0_51, %c0_52] : memref<48x8xf32, #tpu.memory_space<vmem>>, vector<48x8xf32>
    %cst_53 = arith.constant dense<0.000000e+00> : vector<128x8xf32>
    %127 = tpu.matmul %125, %126, %cst_53 {dimension_numbers = #tpu.dot_dimension_numbers<[1], [0], [0], [1], [0, 0, 1, 1], [], []>} : vector<128x48xf32>, vector<48x8xf32>, vector<128x8xf32> -> vector<128x8xf32>
    %c0_54 = arith.constant 0 : index
    %c0_55 = arith.constant 0 : index
    %128 = vector.load %arg9[%c0_54, %c0_55] : memref<1x8xf32, #tpu.memory_space<vmem>>, vector<1x8xf32>
    %129 = vector.broadcast %128 : vector<1x8xf32> to vector<128x8xf32>
    %130 = arith.mulf %127, %129 : vector<128x8xf32>
    %c0_56 = arith.constant 0 : index
    %c0_57 = arith.constant 0 : index
    %131 = vector.load %arg10[%c0_56, %c0_57] : memref<1x8xf32, #tpu.memory_space<vmem>>, vector<1x8xf32>
    %132 = vector.broadcast %131 : vector<1x8xf32> to vector<128x8xf32>
    %133 = arith.addf %130, %132 : vector<128x8xf32>
    %c0_58 = arith.constant 0 : index
    %c0_59 = arith.constant 0 : index
    %c0_60 = arith.constant 0 : index
    %c0_61 = arith.constant 0 : index
    %134 = vector.load %arg1[%c0_58, %c0_59, %c0_60, %c0_61] : memref<1x16x16x8xf32, #tpu.memory_space<vmem>>, vector<1x8x16x8xf32>
    %135 = vector.shape_cast %134 : vector<1x8x16x8xf32> to vector<8x16x8xf32>
    %136 = vector.shape_cast %135 : vector<8x16x8xf32> to vector<128x8xf32>
    %137 = arith.addf %133, %136 : vector<128x8xf32>
    %138 = vector.shape_cast %137 : vector<128x8xf32> to vector<8x16x8xf32>
    %c0_62 = arith.constant 0 : index
    %c0_63 = arith.constant 0 : index
    %c0_64 = arith.constant 0 : index
    %c0_65 = arith.constant 0 : index
    %139 = vector.load %arg11[%c0_62, %c0_63, %c0_64, %c0_65] : memref<1x16x16x8xf32, #tpu.memory_space<vmem>>, vector<1x8x16x8xf32>
    %140 = vector.shape_cast %139 : vector<1x8x16x8xf32> to vector<8x16x8xf32>
    %141 = vector.shape_cast %138 : vector<8x16x8xf32> to vector<1x8x16x8xf32>
    tpu.vector_store %arg11[%c0_62, %c0_63, %c0_64, %c0_65], %141 {strides = array<i32>} : memref<1x16x16x8xf32, #tpu.memory_space<vmem>>, vector<1x8x16x8xf32>,
    %cst_66 = arith.constant 0.000000e+00 : f32
    %142 = vector.broadcast %cst_66 : f32 to vector<8x16x48xf32>
    %c8 = arith.constant 8 : index
    %c0_67 = arith.constant 0 : index
    %c0_68 = arith.constant 0 : index
    %143 = vector.load %arg12[%c8, %c0_67, %c0_68] : memref<18x16x48xf32, #tpu.memory_space<vmem>>, vector<8x16x48xf32>
    %c1_i32_69 = arith.constant 1 : i32
    %144 = vector.broadcast %c1_i32_69 : i32 to vector<1x16x1xi32>
    %145 = arith.cmpi sge, %21, %144 : vector<1x16x1xi32>
    %c1_i32_70 = arith.constant 1 : i32
    %146 = tpu.dynamic_rotate %143 by %c1_i32_70 dim 1 : vector<8x16x48xf32>, i32 -> vector<8x16x48xf32>
    %cst_71 = arith.constant 0.000000e+00 : f32
    %147 = vector.shape_cast %145 : vector<1x16x1xi1> to vector<1x16x1xi1>
    %148 = vector.broadcast %147 : vector<1x16x1xi1> to vector<8x16x48xi1>
    %149 = vector.broadcast %cst_71 : f32 to vector<8x16x48xf32>
    %150 = arith.select %148, %146, %149 : vector<8x16x48xi1>, vector<8x16x48xf32>
    %c14_i32_72 = arith.constant 14 : i32
    %151 = vector.broadcast %c14_i32_72 : i32 to vector<1x16x1xi32>
    %152 = arith.cmpi sle, %21, %151 : vector<1x16x1xi32>
    %c15_i32_73 = arith.constant 15 : i32
    %153 = tpu.dynamic_rotate %143 by %c15_i32_73 dim 1 : vector<8x16x48xf32>, i32 -> vector<8x16x48xf32>
    %cst_74 = arith.constant 0.000000e+00 : f32
    %154 = vector.shape_cast %152 : vector<1x16x1xi1> to vector<1x16x1xi1>
    %155 = vector.broadcast %154 : vector<1x16x1xi1> to vector<8x16x48xi1>
    %156 = vector.broadcast %cst_74 : f32 to vector<8x16x48xf32>
    %157 = arith.select %155, %153, %156 : vector<8x16x48xi1>, vector<8x16x48xf32>
    %158 = vector.extract_strided_slice %20 {offsets = [0, 0], sizes = [1, 48], strides = [1, 1]} : vector<9x48xf32> to vector<1x48xf32>
    %159 = vector.shape_cast %158 : vector<1x48xf32> to vector<1x1x48xf32>
    %160 = vector.broadcast %159 : vector<1x1x48xf32> to vector<8x16x48xf32>
    %161 = arith.mulf %150, %160 : vector<8x16x48xf32>
    %162 = arith.addf %142, %161 : vector<8x16x48xf32>
    %163 = vector.extract_strided_slice %20 {offsets = [1, 0], sizes = [1, 48], strides = [1, 1]} : vector<9x48xf32> to vector<1x48xf32>
    %164 = vector.shape_cast %163 : vector<1x48xf32> to vector<1x1x48xf32>
    %165 = vector.broadcast %164 : vector<1x1x48xf32> to vector<8x16x48xf32>
    %166 = arith.mulf %143, %165 : vector<8x16x48xf32>
    %167 = arith.addf %162, %166 : vector<8x16x48xf32>
    %168 = vector.extract_strided_slice %20 {offsets = [2, 0], sizes = [1, 48], strides = [1, 1]} : vector<9x48xf32> to vector<1x48xf32>
    %169 = vector.shape_cast %168 : vector<1x48xf32> to vector<1x1x48xf32>
    %170 = vector.broadcast %169 : vector<1x1x48xf32> to vector<8x16x48xf32>
    %171 = arith.mulf %157, %170 : vector<8x16x48xf32>
    %172 = arith.addf %167, %171 : vector<8x16x48xf32>
    %c9 = arith.constant 9 : index
    %c0_75 = arith.constant 0 : index
    %c0_76 = arith.constant 0 : index
    %173 = vector.load %arg12[%c9, %c0_75, %c0_76] : memref<18x16x48xf32, #tpu.memory_space<vmem>>, vector<8x16x48xf32>
    %c1_i32_77 = arith.constant 1 : i32
    %174 = vector.broadcast %c1_i32_77 : i32 to vector<1x16x1xi32>
    %175 = arith.cmpi sge, %21, %174 : vector<1x16x1xi32>
    %c1_i32_78 = arith.constant 1 : i32
    %176 = tpu.dynamic_rotate %173 by %c1_i32_78 dim 1 : vector<8x16x48xf32>, i32 -> vector<8x16x48xf32>
    %cst_79 = arith.constant 0.000000e+00 : f32
    %177 = vector.shape_cast %175 : vector<1x16x1xi1> to vector<1x16x1xi1>
    %178 = vector.broadcast %177 : vector<1x16x1xi1> to vector<8x16x48xi1>
    %179 = vector.broadcast %cst_79 : f32 to vector<8x16x48xf32>
    %180 = arith.select %178, %176, %179 : vector<8x16x48xi1>, vector<8x16x48xf32>
    %c14_i32_80 = arith.constant 14 : i32
    %181 = vector.broadcast %c14_i32_80 : i32 to vector<1x16x1xi32>
    %182 = arith.cmpi sle, %21, %181 : vector<1x16x1xi32>
    %c15_i32_81 = arith.constant 15 : i32
    %183 = tpu.dynamic_rotate %173 by %c15_i32_81 dim 1 : vector<8x16x48xf32>, i32 -> vector<8x16x48xf32>
    %cst_82 = arith.constant 0.000000e+00 : f32
    %184 = vector.shape_cast %182 : vector<1x16x1xi1> to vector<1x16x1xi1>
    %185 = vector.broadcast %184 : vector<1x16x1xi1> to vector<8x16x48xi1>
    %186 = vector.broadcast %cst_82 : f32 to vector<8x16x48xf32>
    %187 = arith.select %185, %183, %186 : vector<8x16x48xi1>, vector<8x16x48xf32>
    %188 = vector.extract_strided_slice %20 {offsets = [3, 0], sizes = [1, 48], strides = [1, 1]} : vector<9x48xf32> to vector<1x48xf32>
    %189 = vector.shape_cast %188 : vector<1x48xf32> to vector<1x1x48xf32>
    %190 = vector.broadcast %189 : vector<1x1x48xf32> to vector<8x16x48xf32>
    %191 = arith.mulf %180, %190 : vector<8x16x48xf32>
    %192 = arith.addf %172, %191 : vector<8x16x48xf32>
    %193 = vector.extract_strided_slice %20 {offsets = [4, 0], sizes = [1, 48], strides = [1, 1]} : vector<9x48xf32> to vector<1x48xf32>
    %194 = vector.shape_cast %193 : vector<1x48xf32> to vector<1x1x48xf32>
    %195 = vector.broadcast %194 : vector<1x1x48xf32> to vector<8x16x48xf32>
    %196 = arith.mulf %173, %195 : vector<8x16x48xf32>
    %197 = arith.addf %192, %196 : vector<8x16x48xf32>
    %198 = vector.extract_strided_slice %20 {offsets = [5, 0], sizes = [1, 48], strides = [1, 1]} : vector<9x48xf32> to vector<1x48xf32>
    %199 = vector.shape_cast %198 : vector<1x48xf32> to vector<1x1x48xf32>
    %200 = vector.broadcast %199 : vector<1x1x48xf32> to vector<8x16x48xf32>
    %201 = arith.mulf %187, %200 : vector<8x16x48xf32>
    %202 = arith.addf %197, %201 : vector<8x16x48xf32>
    %c10 = arith.constant 10 : index
    %c0_83 = arith.constant 0 : index
    %c0_84 = arith.constant 0 : index
    %203 = vector.load %arg12[%c10, %c0_83, %c0_84] : memref<18x16x48xf32, #tpu.memory_space<vmem>>, vector<8x16x48xf32>
    %c1_i32_85 = arith.constant 1 : i32
    %204 = vector.broadcast %c1_i32_85 : i32 to vector<1x16x1xi32>
    %205 = arith.cmpi sge, %21, %204 : vector<1x16x1xi32>
    %c1_i32_86 = arith.constant 1 : i32
    %206 = tpu.dynamic_rotate %203 by %c1_i32_86 dim 1 : vector<8x16x48xf32>, i32 -> vector<8x16x48xf32>
    %cst_87 = arith.constant 0.000000e+00 : f32
    %207 = vector.shape_cast %205 : vector<1x16x1xi1> to vector<1x16x1xi1>
    %208 = vector.broadcast %207 : vector<1x16x1xi1> to vector<8x16x48xi1>
    %209 = vector.broadcast %cst_87 : f32 to vector<8x16x48xf32>
    %210 = arith.select %208, %206, %209 : vector<8x16x48xi1>, vector<8x16x48xf32>
    %c14_i32_88 = arith.constant 14 : i32
    %211 = vector.broadcast %c14_i32_88 : i32 to vector<1x16x1xi32>
    %212 = arith.cmpi sle, %21, %211 : vector<1x16x1xi32>
    %c15_i32_89 = arith.constant 15 : i32
    %213 = tpu.dynamic_rotate %203 by %c15_i32_89 dim 1 : vector<8x16x48xf32>, i32 -> vector<8x16x48xf32>
    %cst_90 = arith.constant 0.000000e+00 : f32
    %214 = vector.shape_cast %212 : vector<1x16x1xi1> to vector<1x16x1xi1>
    %215 = vector.broadcast %214 : vector<1x16x1xi1> to vector<8x16x48xi1>
    %216 = vector.broadcast %cst_90 : f32 to vector<8x16x48xf32>
    %217 = arith.select %215, %213, %216 : vector<8x16x48xi1>, vector<8x16x48xf32>
    %218 = vector.extract_strided_slice %20 {offsets = [6, 0], sizes = [1, 48], strides = [1, 1]} : vector<9x48xf32> to vector<1x48xf32>
    %219 = vector.shape_cast %218 : vector<1x48xf32> to vector<1x1x48xf32>
    %220 = vector.broadcast %219 : vector<1x1x48xf32> to vector<8x16x48xf32>
    %221 = arith.mulf %210, %220 : vector<8x16x48xf32>
    %222 = arith.addf %202, %221 : vector<8x16x48xf32>
    %223 = vector.extract_strided_slice %20 {offsets = [7, 0], sizes = [1, 48], strides = [1, 1]} : vector<9x48xf32> to vector<1x48xf32>
    %224 = vector.shape_cast %223 : vector<1x48xf32> to vector<1x1x48xf32>
    %225 = vector.broadcast %224 : vector<1x1x48xf32> to vector<8x16x48xf32>
    %226 = arith.mulf %203, %225 : vector<8x16x48xf32>
    %227 = arith.addf %222, %226 : vector<8x16x48xf32>
    %228 = vector.extract_strided_slice %20 {offsets = [8, 0], sizes = [1, 48], strides = [1, 1]} : vector<9x48xf32> to vector<1x48xf32>
    %229 = vector.shape_cast %228 : vector<1x48xf32> to vector<1x1x48xf32>
    %230 = vector.broadcast %229 : vector<1x1x48xf32> to vector<8x16x48xf32>
    %231 = arith.mulf %217, %230 : vector<8x16x48xf32>
    %232 = arith.addf %227, %231 : vector<8x16x48xf32>
    %c0_91 = arith.constant 0 : index
    %c0_92 = arith.constant 0 : index
    %233 = vector.load %arg6[%c0_91, %c0_92] : memref<1x48xf32, #tpu.memory_space<vmem>>, vector<1x48xf32>
    %234 = vector.shape_cast %233 : vector<1x48xf32> to vector<1x1x48xf32>
    %235 = vector.broadcast %234 : vector<1x1x48xf32> to vector<8x16x48xf32>
    %236 = arith.mulf %232, %235 : vector<8x16x48xf32>
    %c0_93 = arith.constant 0 : index
    %c0_94 = arith.constant 0 : index
    %237 = vector.load %arg7[%c0_93, %c0_94] : memref<1x48xf32, #tpu.memory_space<vmem>>, vector<1x48xf32>
    %238 = vector.shape_cast %237 : vector<1x48xf32> to vector<1x1x48xf32>
    %239 = vector.broadcast %238 : vector<1x1x48xf32> to vector<8x16x48xf32>
    %240 = arith.addf %236, %239 : vector<8x16x48xf32>
    %cst_95 = arith.constant 0.000000e+00 : f32
    %cst_96 = arith.constant 6.000000e+00 : f32
    %241 = vector.broadcast %cst_95 : f32 to vector<8x16x48xf32>
    %242 = arith.maximumf %241, %240 : vector<8x16x48xf32>
    %243 = vector.broadcast %cst_96 : f32 to vector<8x16x48xf32>
    %244 = arith.minimumf %243, %242 : vector<8x16x48xf32>
    %245 = vector.shape_cast %244 : vector<8x16x48xf32> to vector<128x48xf32>
    %c0_97 = arith.constant 0 : index
    %c0_98 = arith.constant 0 : index
    %246 = vector.load %arg8[%c0_97, %c0_98] : memref<48x8xf32, #tpu.memory_space<vmem>>, vector<48x8xf32>
    %cst_99 = arith.constant dense<0.000000e+00> : vector<128x8xf32>
    %247 = tpu.matmul %245, %246, %cst_99 {dimension_numbers = #tpu.dot_dimension_numbers<[1], [0], [0], [1], [0, 0, 1, 1], [], []>} : vector<128x48xf32>, vector<48x8xf32>, vector<128x8xf32> -> vector<128x8xf32>
    %c0_100 = arith.constant 0 : index
    %c0_101 = arith.constant 0 : index
    %248 = vector.load %arg9[%c0_100, %c0_101] : memref<1x8xf32, #tpu.memory_space<vmem>>, vector<1x8xf32>
    %249 = vector.broadcast %248 : vector<1x8xf32> to vector<128x8xf32>
    %250 = arith.mulf %247, %249 : vector<128x8xf32>
    %c0_102 = arith.constant 0 : index
    %c0_103 = arith.constant 0 : index
    %251 = vector.load %arg10[%c0_102, %c0_103] : memref<1x8xf32, #tpu.memory_space<vmem>>, vector<1x8xf32>
    %252 = vector.broadcast %251 : vector<1x8xf32> to vector<128x8xf32>
    %253 = arith.addf %250, %252 : vector<128x8xf32>
    %c0_104 = arith.constant 0 : index
    %c8_105 = arith.constant 8 : index
    %c0_106 = arith.constant 0 : index
    %c0_107 = arith.constant 0 : index
    %254 = vector.load %arg1[%c0_104, %c8_105, %c0_106, %c0_107] : memref<1x16x16x8xf32, #tpu.memory_space<vmem>>, vector<1x8x16x8xf32>
    %255 = vector.shape_cast %254 : vector<1x8x16x8xf32> to vector<8x16x8xf32>
    %256 = vector.shape_cast %255 : vector<8x16x8xf32> to vector<128x8xf32>
    %257 = arith.addf %253, %256 : vector<128x8xf32>
    %258 = vector.shape_cast %257 : vector<128x8xf32> to vector<8x16x8xf32>
    %c0_108 = arith.constant 0 : index
    %c8_109 = arith.constant 8 : index
    %c0_110 = arith.constant 0 : index
    %c0_111 = arith.constant 0 : index
    %259 = vector.load %arg11[%c0_108, %c8_109, %c0_110, %c0_111] : memref<1x16x16x8xf32, #tpu.memory_space<vmem>>, vector<1x8x16x8xf32>
    %260 = vector.shape_cast %259 : vector<1x8x16x8xf32> to vector<8x16x8xf32>
    %261 = vector.shape_cast %258 : vector<8x16x8xf32> to vector<1x8x16x8xf32>
    tpu.vector_store %arg11[%c0_108, %c8_109, %c0_110, %c0_111], %261 {strides = array<i32>} : memref<1x16x16x8xf32, #tpu.memory_space<vmem>>, vector<1x8x16x8xf32>,
    return
  }
  func.func @transform_0(%arg0: i32) -> (i32, i32, i32, i32) {
    %c0_i32 = arith.constant 0 : i32
    %c0_i32_0 = arith.constant 0 : i32
    %c0_i32_1 = arith.constant 0 : i32
    %c0_i32_2 = arith.constant 0 : i32
    return %arg0, %c0_i32, %c0_i32_0, %c0_i32_1 : i32, i32, i32, i32
  }
  func.func @transform_1(%arg0: i32) -> (i32, i32) {
    %c0_i32 = arith.constant 0 : i32
    %c0_i32_0 = arith.constant 0 : i32
    %c0_i32_1 = arith.constant 0 : i32
    return %c0_i32, %c0_i32_0 : i32, i32
  }
  func.func @transform_2(%arg0: i32) -> (i32, i32) {
    %c0_i32 = arith.constant 0 : i32
    %c0_i32_0 = arith.constant 0 : i32
    %c0_i32_1 = arith.constant 0 : i32
    return %c0_i32, %c0_i32_0 : i32, i32
  }
  func.func @transform_3(%arg0: i32) -> (i32, i32) {
    %c0_i32 = arith.constant 0 : i32
    %c0_i32_0 = arith.constant 0 : i32
    %c0_i32_1 = arith.constant 0 : i32
    return %c0_i32, %c0_i32_0 : i32, i32
  }
  func.func @transform_4(%arg0: i32) -> (i32, i32) {
    %c0_i32 = arith.constant 0 : i32
    %c0_i32_0 = arith.constant 0 : i32
    %c0_i32_1 = arith.constant 0 : i32
    return %c0_i32, %c0_i32_0 : i32, i32
  }
  func.func @transform_5(%arg0: i32) -> (i32, i32) {
    %c0_i32 = arith.constant 0 : i32
    %c0_i32_0 = arith.constant 0 : i32
    %c0_i32_1 = arith.constant 0 : i32
    return %c0_i32, %c0_i32_0 : i32, i32
  }
  func.func @transform_6(%arg0: i32) -> (i32, i32) {
    %c0_i32 = arith.constant 0 : i32
    %c0_i32_0 = arith.constant 0 : i32
    %c0_i32_1 = arith.constant 0 : i32
    return %c0_i32, %c0_i32_0 : i32, i32
  }
  func.func @transform_7(%arg0: i32) -> (i32, i32) {
    %c0_i32 = arith.constant 0 : i32
    %c0_i32_0 = arith.constant 0 : i32
    %c0_i32_1 = arith.constant 0 : i32
    return %c0_i32, %c0_i32_0 : i32, i32
  }
  func.func @transform_8(%arg0: i32) -> (i32, i32) {
    %c0_i32 = arith.constant 0 : i32
    %c0_i32_0 = arith.constant 0 : i32
    %c0_i32_1 = arith.constant 0 : i32
    return %c0_i32, %c0_i32_0 : i32, i32
  }
  func.func @transform_9(%arg0: i32) -> (i32, i32) {
    %c0_i32 = arith.constant 0 : i32
    %c0_i32_0 = arith.constant 0 : i32
    %c0_i32_1 = arith.constant 0 : i32
    return %c0_i32, %c0_i32_0 : i32, i32
  }
  func.func @transform_10(%arg0: i32) -> (i32, i32, i32, i32) {
    %c0_i32 = arith.constant 0 : i32
    %c0_i32_0 = arith.constant 0 : i32
    %c0_i32_1 = arith.constant 0 : i32
    %c0_i32_2 = arith.constant 0 : i32
    return %arg0, %c0_i32, %c0_i32_0, %c0_i32_1 : i32, i32, i32, i32
  }
}

</mosaic_0001>

<bundles_post_ra>
// kernel: tpu_custom_call.1
= control target key start
LH: loop header
LB: loop body
LE: loop exit
PB: predicated region body
PF: predicated region fallthrough
CT: control target
= control target key end

     0   :  { %s3409_s13 = smov 0   ;;  %s5042_s0 = inlined_call_operand.vmem [shape: f32[2,16,16,8], index: 0, kind: input, shape index: {}]   ;;  %s5043_s1 = inlined_call_operand.vmem [shape: f32[8,48], index: 1, kind: input, shape index: {}]   ;;  %s5044_s2 = inlined_call_operand.vmem [shape: f32[1,48], index: 2, kind: input, shape index: {}]   ;;  %s5045_s3 = inlined_call_operand.vmem [shape: f32[1,48], index: 3, kind: input, shape index: {}]   ;;  %s5046_s4 = inlined_call_operand.vmem [shape: f32[9,48], index: 4, kind: input, shape index: {}]   ;;  %s5047_s5 = inlined_call_operand.vmem [shape: f32[1,48], index: 5, kind: input, shape index: {}]   ;;  %s5048_s6 = inlined_call_operand.vmem [shape: f32[1,48], index: 6, kind: input, shape index: {}]   ;;  %s5049_s7 = inlined_call_operand.vmem [shape: f32[48,8], index: 7, kind: input, shape index: {}]   ;;  %s5050_s8 = inlined_call_operand.vmem [shape: f32[1,8], index: 8, kind: input, shape index: {}]   ;;  %s5051_s9 = inlined_call_operand.vmem [shape: f32[1,8], index: 9, kind: input, shape index: {}]   ;;  %s5052_s10 = inlined_call_operand.vmem [shape: f32[2,16,16,8], index: 10, kind: output, shape index: {}]  }
   0x1 LB: > { %s3002_s14 = sadd.s32 4294967295, %s3351_s13   ;;  %p3006_p0 = scmp.ge.s32.totalorder %s3351_s13, 1  ;;  %s3351_s13 = sphi %s3409_s13, %s20_s13  }
   0x2   : > { %p312_p1 = scmp.lt.s32.totalorder %s3351_s13, 3 }
   0x4   : > { %p313_p2 = pnand %p3006_p0, %p312_p1 }
   0x5   : > { %p350_p3 = scmp.lt.s32.totalorder (!%p313_p2), %s3002_s14, 1 }
   0x6   : > { %316 = sbr.rel (%p313_p2) target bundleno = 675 (0x2a3), region = 60 }
   0xb   : > { %v392_v0 = vld [vmem:[%s5043_s1] sm:$0xff]  ;;  %s5054_s14 = smov (!%p350_p3, %s3002_s14), 1  ;;  %vm393_vm0 = vcmask 64512   ;;  %vm858_vm1 = vcmask 392192   ;;  %v3353_v33 = vmov 0.0   ;;  %v3501_v34 = vld [vmem:[%s5049_s7 + $0x28] sm:$0xff]  ;;  %v898_v40 = vlaneseq }
   0xc   : > { %3199 = vmatprep.subr.mxu0 %v392_v0  ;;  %s3120_s17 = sshll.u32 %s5054_s14, 8  ;;  %891 = vst.msk [vmem:[#allocation2] sm:$0xff] %vm858_vm1, %v3353_v33  ;;  %892 = vst.msk [vmem:[#allocation2 + $0x8] sm:$0xff] %vm858_vm1, %v3353_v33  ;;  %3321 = vmatprep.subr.mxu1 %v3501_v34  ;;  %v3509_v35 = vld [vmem:[%s5049_s7 + $0x20] sm:$0xff]  ;;  %v3518_v36 = vld [vmem:[%s5049_s7 + $0x18] sm:$0xff] }
   0xd   : > { %3200 = vmatpush3.msra.mxu0 %v392_v0  ;;  %s3428_s20 = scalar_lea.vmem %s5042_s0, %s3120_s17  ;;  %894 = vst.msk [vmem:[#allocation2 + $0x110] sm:$0xff] %vm858_vm1, %v3353_v33  ;;  %895 = vst.msk [vmem:[#allocation2 + $0x118] sm:$0xff] %vm858_vm1, %v3353_v33  ;;  %3327 = vmatpush3.msra.mxu1 %v3501_v34  ;;  %v1656_v37 = vld [vmem:[%s5049_s7 + $0x10] sm:$0xff]  ;;  %v1655_v38 = vld [vmem:[%s5049_s7 + $0x8] sm:$0xff]  ;;  %v3535_v43 = vshrl.u32 %v898_v40, 7  ;;  %s4873_s18 = scalar_lea.vmem %s5052_s10, %s3120_s17 }
   0xe   : > { %v360_v1 = vld [vmem:[%s3428_s20] sm:$0xff]  ;;  %v361_v2 = vld [vmem:[%s3428_s20 + $0x8] sm:$0xff]  ;;  %v362_v3 = vld [vmem:[%s3428_s20 + $0x10] sm:$0xff]  ;;  %3249 = vmatprep.subr.mxu0 %v3501_v34  ;;  %3322 = vmatprep.subr.mxu1 %v3509_v35 }
   0xf   : > { %3201 = vmatprep.mubr.msk.f32.mxu0 %vm393_vm0, %v360_v1  ;;  %v363_v4 = vld [vmem:[%s3428_s20 + $0x18] sm:$0xff]  ;;  %v364_v5 = vld [vmem:[%s3428_s20 + $0x20] sm:$0xff]  ;;  %v365_v6 = vld [vmem:[%s3428_s20 + $0x28] sm:$0xff]  ;;  %3328 = vmatpush3.msra.mxu1 %v3509_v35  ;;  %vm935_vm2 = vcmp.lt.s32.totalorder %v3535_v43, 1  ;;  %v1029_v47 = vsub.s32 0, %v3535_v43  ;;  %vm917_vm3 = vcmp.ge.s32.totalorder %v3535_v43, 1 }
  0x10   : > { %3202 = vmatmul.mubr.msk.f32.vlgmr.msra.gmra.mxu0 %vm393_vm0, %v361_v2  ;;  %v366_v7 = vld [vmem:[%s3428_s20 + $0x30] sm:$0xff]  ;;  %v367_v8 = vld [vmem:[%s3428_s20 + $0x38] sm:$0xff]  ;;  %v368_v9 = vld [vmem:[%s3428_s20 + $0x40] sm:$0xff]  ;;  %3323 = vmatprep.subr.mxu1 %v3518_v36  ;;  %v1065_v52 = vsub.s32 1, %v3535_v43  ;;  %v3563_v58 = vadd.s32 8, %v3535_v43  ;;  %vm990_vm4 = vcmp.lt.s32.totalorder %v3535_v43, 7 }
  0x11   : > { %3204 = vmatprep.mubr.msk.f32.mxu0 %vm393_vm0, %v362_v3  ;;  %v369_v10 = vld [vmem:[%s3428_s20 + $0x48] sm:$0xff]  ;;  %v370_v11 = vld [vmem:[%s3428_s20 + $0x50] sm:$0xff]  ;;  %v371_v12 = vld [vmem:[%s3428_s20 + $0x58] sm:$0xff]  ;;  %3250 = vmatpush3.msra.mxu0 %v3501_v34  ;;  %v1101_v0 = vsub.s32 2, %v3535_v43  ;;  %v1321_v33 = vsub.s32 5, %v3535_v43 }
  0x12   : > { %v372_v13 = vld [vmem:[%s3428_s20 + $0x60] sm:$0xff]  ;;  %v373_v14 = vld [vmem:[%s3428_s20 + $0x68] sm:$0xff]  ;;  %v374_v15 = vld [vmem:[%s3428_s20 + $0x70] sm:$0xff]  ;;  %3251 = vmatprep.subr.mxu0 %v3509_v35  ;;  %3329 = vmatpush3.msra.mxu1 %v3518_v36  ;;  %vm973_vm5 = vcmp.le.s32.totalorder %v3563_v58, 14 }
  0x13   : > { %v375_v16 = vld [vmem:[%s3428_s20 + $0x78] sm:$0xff]  ;;  %v376_v17 = vld [vmem:[%s3428_s20 + $0x80] sm:$0xff]  ;;  %v377_v18 = vld [vmem:[%s3428_s20 + $0x88] sm:$0xff]  ;;  %3252 = vmatpush3.msra.mxu0 %v3509_v35  ;;  %3324 = vmatprep.subr.mxu1 %v1656_v37 }
  0x14   : > { %3205 = vmatmul.mubr.msk.f32.gmra.mxu0 %vm393_vm0, %v363_v4  ;;  %v378_v19 = vld [vmem:[%s3428_s20 + $0x90] sm:$0xff]  ;;  %v379_v20 = vld [vmem:[%s3428_s20 + $0x98] sm:$0xff]  ;;  %v380_v21 = vld [vmem:[%s3428_s20 + $0xa0] sm:$0xff]  ;;  %3253 = vmatprep.subr.mxu0 %v3518_v36 }
  0x15   : > { %3207 = vmatprep.mubr.msk.f32.mxu0 %vm393_vm0, %v364_v5  ;;  %v381_v22 = vld [vmem:[%s3428_s20 + $0xa8] sm:$0xff]  ;;  %v382_v23 = vld [vmem:[%s3428_s20 + $0xb0] sm:$0xff]  ;;  %v383_v24 = vld [vmem:[%s3428_s20 + $0xb8] sm:$0xff]  ;;  %3254 = vmatpush3.msra.mxu0 %v3518_v36 }
  0x16   : > { %v384_v25 = vld [vmem:[%s3428_s20 + $0xc0] sm:$0xff]  ;;  %v385_v26 = vld [vmem:[%s3428_s20 + $0xc8] sm:$0xff]  ;;  %v386_v27 = vld [vmem:[%s3428_s20 + $0xd0] sm:$0xff]  ;;  %3255 = vmatprep.subr.mxu0 %v1656_v37  ;;  %3330 = vmatpush3.msra.mxu1 %v1656_v37 }
  0x17   : > { %v387_v28 = vld [vmem:[%s3428_s20 + $0xd8] sm:$0xff]  ;;  %v388_v29 = vld [vmem:[%s3428_s20 + $0xe0] sm:$0xff]  ;;  %v389_v30 = vld [vmem:[%s3428_s20 + $0xe8] sm:$0xff]  ;;  %3256 = vmatpush3.msra.mxu0 %v1656_v37  ;;  %3325 = vmatprep.subr.mxu1 %v1655_v38  ;;  %v1470_v37 = vsub.s32 6, %v3535_v43 }
  0x18   : > { %3208 = vmatmul.mubr.msk.f32.gmra.mxu0 %vm393_vm0, %v365_v6  ;;  %v390_v31 = vld [vmem:[%s3428_s20 + $0xf0] sm:$0xff]  ;;  %v391_v32 = vld [vmem:[%s3428_s20 + $0xf8] sm:$0xff]  ;;  %3257 = vmatprep.subr.mxu0 %v1655_v38  ;;  %v1654_v39 = vld [vmem:[%s5049_s7] sm:$0xff] }
  0x19   : > { %3210 = vmatprep.mubr.msk.f32.mxu0 %vm393_vm0, %v366_v7  ;;  %3258 = vmatpush3.msra.mxu0 %v1655_v38  ;;  %v901_v41 = vld [vmem:[#allocation2] sm:$0xff]  ;;  %v902_v42 = vld [vmem:[#allocation2 + $0x8] sm:$0xff] }
  0x1a   : > { %3331 = vmatpush3.msra.mxu1 %v1655_v38  ;;  %3259 = vmatprep.subr.mxu0 %v1654_v39  ;;  %v919_v44 = vrot.slane %v901_v41, 7  ;;  %v927_v45 = vrot.slane %v902_v42, 7  ;;  %v3541_v46 = vld [vmem:[%s5044_s2] ss:$0 sm:$0xff]  ;;  %v974_v55 = vrot.slane %v901_v41, 1  ;;  %v982_v56 = vrot.slane %v902_v42, 1 }
  0x1b   : > { %3326 = vmatprep.subr.mxu1 %v1654_v39  ;;  %3260 = vmatpush3.msra.mxu0 %v1654_v39  ;;  %v3547_v48 = vld [vmem:[%s5046_s4] sm:$0xff]  ;;  %v1506_v38 = vsub.s32 7, %v3535_v43 }
  0x1c   : > { %3211 = vmatmul.mubr.msk.f32.gmra.mxu0 %vm393_vm0, %v367_v8  ;;  %3332 = vmatpush3.msra.mxu1 %v1654_v39  ;;  %v3552_v50 = vld [vmem:[%s5045_s3] ss:$0 sm:$0xff]  ;;  %v944_v51 = vsel %vm935_vm2, %v927_v45, %v919_v44  ;;  %v3560_v57 = vrot.slane %v3547_v48, %v1029_v47  ;;  %v3571_v63 = vrot.slane %v3547_v48, %v1065_v52 }
  0x1d   : > { %3213 = vmatprep.mubr.msk.f32.mxu0 %vm393_vm0, %v368_v9  ;;  %3285 = vmatprep.subr.mxu1 %v3501_v34  ;;  %v956_v61 = vsel %vm917_vm3, %v944_v51, 0.0  ;;  %v936_v4 = vsel %vm935_vm2, %v919_v44, %v927_v45  ;;  %v999_v6 = vsel %vm990_vm4, %v982_v56, %v974_v55  ;;  %v1899_v58 = vld [vmem:[%s3428_s20] sm:$0xff] }
  0x1e   : > { %v1031_v7 = vmul.f32 %v3560_v57, %v956_v61  ;;  %v1067_v8 = vmul.f32 %v3571_v63, %v901_v41  ;;  %v3624_v61 = vrot.slane %v3547_v48, %v1321_v33 }
  0x20   : > { %3214 = vmatmul.mubr.msk.f32.gmra.mxu0 %vm393_vm0, %v369_v10 }
  0x21   : > { %3216 = vmatprep.mubr.msk.f32.mxu0 %vm393_vm0, %v370_v11 }
  0x24   : > { %3217 = vmatmul.mubr.msk.f32.gmra.mxu0 %vm393_vm0, %v371_v12 }
  0x25   : > { %3219 = vmatprep.mubr.msk.f32.mxu0 %vm393_vm0, %v372_v13 }
  0x28   : > { %3220 = vmatmul.mubr.msk.f32.gmra.mxu0 %vm393_vm0, %v373_v14  ;;  %v991_v14 = vsel %vm990_vm4, %v974_v55, %v982_v56 }
  0x29   : > { %3222 = vmatprep.mubr.msk.f32.mxu0 %vm393_vm0, %v374_v15  ;;  %v1068_v15 = vmul.f32 %v3571_v63, %v902_v42 }
  0x2c   : > { %3223 = vmatmul.mubr.msk.f32.gmra.mxu0 %vm393_vm0, %v375_v16  ;;  %v3589_v16 = vrot.slane %v3547_v48, %v1101_v0  ;;  %v3630_v0 = vrot.slane %v3547_v48, %v1506_v38 }
  0x2d   : > { %3225 = vmatprep.mubr.msk.f32.mxu0 %vm393_vm0, %v376_v17  ;;  %v1285_v17 = vsub.s32 4, %v3535_v43 }
  0x2f   : > { %v3613_v47 = vrot.slane %v3547_v48, %v1285_v17 }
  0x30   : > { %3226 = vmatmul.mubr.msk.f32.gmra.mxu0 %vm393_vm0, %v377_v18 }
  0x31   : > { %3228 = vmatprep.mubr.msk.f32.mxu0 %vm393_vm0, %v378_v19 }
  0x34   : > { %3229 = vmatmul.mubr.msk.f32.gmra.mxu0 %vm393_vm0, %v379_v20 }
  0x35   : > { %3231 = vmatprep.mubr.msk.f32.mxu0 %vm393_vm0, %v380_v21 }
  0x38   : > { %3232 = vmatmul.mubr.msk.f32.gmra.mxu0 %vm393_vm0, %v381_v22 }
  0x39   : > { %3234 = vmatprep.mubr.msk.f32.mxu0 %vm393_vm0, %v382_v23  ;;  %v1083_v23 = vadd.f32 %v1067_v8, %v1031_v7 }
  0x3c   : > { %3235 = vmatmul.mubr.msk.f32.gmra.mxu0 %vm393_vm0, %v383_v24  ;;  %v1249_v24 = vsub.s32 3, %v3535_v43 }
  0x3d   : > { %3237 = vmatprep.mubr.msk.f32.mxu0 %vm393_vm0, %v384_v25  ;;  %v1012_v25 = vsel %vm973_vm5, %v999_v6, 0.0 }
  0x3e   : > { %v3610_v45 = vrot.slane %v3547_v48, %v1249_v24  ;;  %v1104_v51 = vmul.f32 %v3589_v16, %v1012_v25 }
  0x40   : > { %3238 = vmatmul.mubr.msk.f32.gmra.mxu0 %vm393_vm0, %v385_v26  ;;  %v1032_v26 = vmul.f32 %v3560_v57, %v936_v4 }
  0x41   : > { %3240 = vmatprep.mubr.msk.f32.mxu0 %vm393_vm0, %v386_v27 }
  0x44   : > { %3241 = vmatmul.mubr.msk.f32.gmra.mxu0 %vm393_vm0, %v387_v28 }
  0x45   : > { %3243 = vmatprep.mubr.msk.f32.mxu0 %vm393_vm0, %v388_v29 }
  0x48   : > { %3244 = vmatmul.mubr.msk.f32.gmra.mxu0 %vm393_vm0, %v389_v30 }
  0x49   : > { %3246 = vmatprep.mubr.msk.f32.mxu0 %vm393_vm0, %v390_v31 }
  0x4c   : > { %3247 = vmatmul.mubr.msk.f32.gmra.mxu0 %vm393_vm0, %v391_v32  ;;  %v1103_v32 = vmul.f32 %v3589_v16, %v991_v14 }
  0xd0   : > { %v3203_v49 = vpop.f32.mrf.mxu0 }
  0xd1   : > { %v723_v53 = vmul.f32 %v3203_v49, %v3541_v46  ;;  %v1084_v49 = vadd.f32 %v1068_v15, %v1032_v26 }
  0xd2   : > { %v556_v54 = vpop.f32.mrf.mxu0 }
  0xd3   : > { %v762_v59 = vadd.f32 %v3552_v50, %v723_v53  ;;  %v722_v60 = vmul.f32 %v3541_v46, %v556_v54 }
  0xd4   : > { %v3206_v62 = vpop.f32.mrf.mxu0 }
  0xd5   : > { %v794_v1 = vmax.f32 %v762_v59, 0.0  ;;  %v761_v2 = vadd.f32 %v3552_v50, %v722_v60  ;;  %v725_v3 = vmul.f32 %v3206_v62, %v3541_v46  ;;  %v3619_v59 = vadd.f32 %v1103_v32, %v1083_v23 }
  0xd6   : > { %v566_v5 = vpop.f32.mrf.mxu0  ;;  %v3627_v62 = vrot.slane %v3547_v48, %v1470_v37  ;;  %v3641_v48 = vadd.f32 %v1104_v51, %v1084_v49 }
  0xd7   : > { %v826_v9 = vmin.f32 %v794_v1, 6.0  ;;  %v793_v10 = vmax.f32 %v761_v2, 0.0  ;;  %v764_v11 = vadd.f32 %v3552_v50, %v725_v3  ;;  %v724_v12 = vmul.f32 %v3541_v46, %v566_v5 }
  0xd8   : > { %v3209_v13 = vpop.f32.mrf.mxu0 }
  0xd9   : > { %860 = vst.msk [vmem:[#allocation2 + $0x18] sm:$0xff] %vm858_vm1, %v826_v9  ;;  %v825_v18 = vmin.f32 %v793_v10, 6.0  ;;  %v796_v19 = vmax.f32 %v764_v11, 0.0  ;;  %v763_v20 = vadd.f32 %v3552_v50, %v724_v12  ;;  %v727_v21 = vmul.f32 %v3209_v13, %v3541_v46 }
  0xda   : > { %v576_v22 = vpop.f32.mrf.mxu0 }
  0xdb   : > { %859 = vst.msk [vmem:[#allocation2 + $0x10] sm:$0xff] %vm858_vm1, %v825_v18  ;;  %v828_v27 = vmin.f32 %v796_v19, 6.0  ;;  %v795_v28 = vmax.f32 %v763_v20, 0.0  ;;  %v766_v29 = vadd.f32 %v3552_v50, %v727_v21  ;;  %v726_v30 = vmul.f32 %v3541_v46, %v576_v22 }
  0xdc   : > { %v3212_v31 = vpop.f32.mrf.mxu0 }
  0xdd   : > { %862 = vst.msk [vmem:[#allocation2 + $0x28] sm:$0xff] %vm858_vm1, %v828_v27  ;;  %v827_v39 = vmin.f32 %v795_v28, 6.0  ;;  %v798_v40 = vmax.f32 %v766_v29, 0.0  ;;  %v765_v41 = vadd.f32 %v3552_v50, %v726_v30  ;;  %v729_v42 = vmul.f32 %v3212_v31, %v3541_v46 }
  0xde   : > { %v586_v44 = vpop.f32.mrf.mxu0 }
  0xdf   : > { %861 = vst.msk [vmem:[#allocation2 + $0x20] sm:$0xff] %vm858_vm1, %v827_v39  ;;  %v830_v52 = vmin.f32 %v798_v40, 6.0  ;;  %v797_v53 = vmax.f32 %v765_v41, 0.0  ;;  %v768_v54 = vadd.f32 %v3552_v50, %v729_v42  ;;  %v728_v55 = vmul.f32 %v3541_v46, %v586_v44 }
  0xe0   : > { %v3215_v56 = vpop.f32.mrf.mxu0  ;;  %v3621_v60 = vld [vmem:[#allocation2 + $0x18] sm:$0xff] }
  0xe1   : > { %864 = vst.msk [vmem:[#allocation2 + $0x38] sm:$0xff] %vm858_vm1, %v830_v52  ;;  %v829_v1 = vmin.f32 %v797_v53, 6.0  ;;  %v800_v2 = vmax.f32 %v768_v54, 0.0  ;;  %v767_v3 = vadd.f32 %v3552_v50, %v728_v55  ;;  %v731_v4 = vmul.f32 %v3215_v56, %v3541_v46 }
  0xe2   : > { %v596_v5 = vpop.f32.mrf.mxu0  ;;  %v1135_v6 = vld [vmem:[#allocation2 + $0x10] sm:$0xff]  ;;  %v1159_v7 = vrot.slane %v3621_v60, 7  ;;  %v1207_v8 = vrot.slane %v3621_v60, 1  ;;  %v3639_v9 = vmul.f32 %v3613_v47, %v3621_v60 }
  0xe3   : > { %863 = vst.msk [vmem:[#allocation2 + $0x30] sm:$0xff] %vm858_vm1, %v829_v1  ;;  %v832_v10 = vmin.f32 %v800_v2, 6.0  ;;  %v799_v11 = vmax.f32 %v767_v3, 0.0  ;;  %v770_v12 = vadd.f32 %v3552_v50, %v731_v4  ;;  %v730_v13 = vmul.f32 %v3541_v46, %v596_v5 }
  0xe4   : > { %v3218_v14 = vpop.f32.mrf.mxu0  ;;  %v1151_v15 = vrot.slane %v1135_v6, 7  ;;  %v1199_v17 = vrot.slane %v1135_v6, 1  ;;  %v1287_v18 = vmul.f32 %v3613_v47, %v1135_v6  ;;  %v3648_v19 = vmul.f32 %v1135_v6, %v3571_v63  ;;  %v3670_v37 = vld [vmem:[#allocation2 + $0x28] sm:$0xff] }
  0xe5   : > { %866 = vst.msk [vmem:[#allocation2 + $0x48] sm:$0xff] %vm858_vm1, %v832_v10  ;;  %v831_v20 = vmin.f32 %v799_v11, 6.0  ;;  %v802_v21 = vmax.f32 %v770_v12, 0.0  ;;  %v769_v22 = vadd.f32 %v3552_v50, %v730_v13  ;;  %v733_v23 = vmul.f32 %v3218_v14, %v3541_v46 }
  0xe6   : > { %v606_v24 = vpop.f32.mrf.mxu0  ;;  %v3655_v25 = vsel %vm935_vm2, %v1151_v15, %v1159_v7  ;;  %v1175_v26 = vsel %vm935_vm2, %v1159_v7, %v1151_v15  ;;  %v3661_v27 = vsel %vm990_vm4, %v1199_v17, %v1207_v8  ;;  %v1223_v28 = vsel %vm990_vm4, %v1207_v8, %v1199_v17  ;;  %v3665_v29 = vld [vmem:[#allocation2 + $0x20] sm:$0xff] }
  0xe7   : > { %865 = vst.msk [vmem:[#allocation2 + $0x40] sm:$0xff] %vm858_vm1, %v831_v20  ;;  %v834_v30 = vmin.f32 %v802_v21, 6.0  ;;  %v801_v31 = vmax.f32 %v769_v22, 0.0  ;;  %v772_v32 = vadd.f32 %v3552_v50, %v733_v23  ;;  %v732_v33 = vmul.f32 %v3541_v46, %v606_v24 }
  0xe8   : > { %v3221_v38 = vpop.f32.mrf.mxu0  ;;  %v3674_v39 = vsel %vm917_vm3, %v1175_v26, 0.0  ;;  %v1252_v40 = vmul.f32 %v3610_v45, %v3655_v25  ;;  %v1323_v41 = vmul.f32 %v3624_v61, %v3661_v27  ;;  %v1372_v42 = vrot.slane %v3665_v29, 7 }
  0xe9   : > { %868 = vst.msk [vmem:[#allocation2 + $0x58] sm:$0xff] %vm858_vm1, %v834_v30  ;;  %v833_v44 = vmin.f32 %v801_v31, 6.0  ;;  %v804_v49 = vmax.f32 %v772_v32, 0.0  ;;  %v771_v51 = vadd.f32 %v3552_v50, %v732_v33  ;;  %v735_v52 = vmul.f32 %v3221_v38, %v3541_v46 }
  0xea   : > { %v616_v53 = vpop.f32.mrf.mxu0  ;;  %v1251_v54 = vmul.f32 %v3610_v45, %v3674_v39  ;;  %v1380_v55 = vrot.slane %v3670_v37, 7  ;;  %v1420_v56 = vrot.slane %v3665_v29, 1  ;;  %v1428_v1 = vrot.slane %v3670_v37, 1 }
  0xeb   : > { %867 = vst.msk [vmem:[#allocation2 + $0x50] sm:$0xff] %vm858_vm1, %v833_v44  ;;  %v836_v2 = vmin.f32 %v804_v49, 6.0  ;;  %v803_v3 = vmax.f32 %v771_v51, 0.0  ;;  %v774_v4 = vadd.f32 %v3552_v50, %v735_v52  ;;  %v734_v5 = vmul.f32 %v3541_v46, %v616_v53 }
  0xec   : > { %v3224_v6 = vpop.f32.mrf.mxu0  ;;  %v1267_v7 = vadd.f32 %v1251_v54, %v3619_v59  ;;  %v3695_v8 = vsel %vm935_vm2, %v1372_v42, %v1380_v55  ;;  %v1396_v10 = vsel %vm935_vm2, %v1380_v55, %v1372_v42  ;;  %v3701_v11 = vsel %vm990_vm4, %v1420_v56, %v1428_v1 }
  0xed   : > { %870 = vst.msk [vmem:[#allocation2 + $0x68] sm:$0xff] %vm858_vm1, %v836_v2  ;;  %v835_v12 = vmin.f32 %v803_v3, 6.0  ;;  %v806_v13 = vmax.f32 %v774_v4, 0.0  ;;  %v773_v14 = vadd.f32 %v3552_v50, %v734_v5  ;;  %v737_v15 = vmul.f32 %v3224_v6, %v3541_v46 }
  0xee   : > { %v626_v59 = vpop.f32.mrf.mxu0  ;;  %v1303_v17 = vadd.f32 %v1287_v18, %v1267_v7  ;;  %v3708_v20 = vsel %vm917_vm3, %v1396_v10, 0.0  ;;  %v1444_v21 = vsel %vm990_vm4, %v1428_v1, %v1420_v56  ;;  %v1473_v22 = vmul.f32 %v3627_v62, %v3695_v8  ;;  %v3720_v18 = vld [vmem:[%s5046_s4 + $0x8] ss:$0 sm:$0xff] }
  0xef   : > { %869 = vst.msk [vmem:[#allocation2 + $0x60] sm:$0xff] %vm858_vm1, %v835_v12  ;;  %v838_v23 = vmin.f32 %v806_v13, 6.0  ;;  %v805_v24 = vmax.f32 %v773_v14, 0.0  ;;  %v776_v26 = vadd.f32 %v3552_v50, %v737_v15  ;;  %v736_v30 = vmul.f32 %v3541_v46, %v626_v59  ;;  %v3754_v14 = vld [vmem:[%s5047_s5] ss:$0 sm:$0xff] }
  0xf0   : > { %v3227_v31 = vpop.f32.mrf.mxu0  ;;  %v1339_v32 = vadd.f32 %v1323_v41, %v1303_v17  ;;  %v1472_v33 = vmul.f32 %v3627_v62, %v3708_v20  ;;  %v1508_v38 = vmul.f32 %v3630_v0, %v3665_v29  ;;  %v1509_v42 = vmul.f32 %v3630_v0, %v3670_v37 }
  0xf1   : > { %872 = vst.msk [vmem:[#allocation2 + $0x78] sm:$0xff] %vm858_vm1, %v838_v23  ;;  %v837_v44 = vmin.f32 %v805_v24, 6.0  ;;  %v808_v49 = vmax.f32 %v776_v26, 0.0  ;;  %v775_v51 = vadd.f32 %v3552_v50, %v736_v30  ;;  %v739_v52 = vmul.f32 %v3227_v31, %v3541_v46  ;;  %v3766_v31 = vld [vmem:[%s5048_s6] ss:$0 sm:$0xff] }
  0xf2   : > { %v636_v53 = vpop.f32.mrf.mxu0  ;;  %v1488_v54 = vadd.f32 %v1472_v33, %v1339_v32  ;;  %v1544_v41 = vmul.f32 %v3720_v18, %v3701_v11  ;;  %v3735_v55 = vsel %vm973_vm5, %v1223_v28, 0.0  ;;  %v1268_v56 = vadd.f32 %v1252_v40, %v3641_v48 }
  0xf3   : > { %871 = vst.msk [vmem:[#allocation2 + $0x70] sm:$0xff] %vm858_vm1, %v837_v44  ;;  %v840_v1 = vmin.f32 %v808_v49, 6.0  ;;  %v807_v2 = vmax.f32 %v775_v51, 0.0  ;;  %v778_v3 = vadd.f32 %v3552_v50, %v739_v52  ;;  %v738_v4 = vmul.f32 %v3541_v46, %v636_v53 }
  0xf4   : > { %v3230_v5 = vpop.f32.mrf.mxu0  ;;  %v1524_v6 = vadd.f32 %v1508_v38, %v1488_v54  ;;  %v1304_v7 = vadd.f32 %v3639_v9, %v1268_v56  ;;  %v1324_v10 = vmul.f32 %v3624_v61, %v3735_v55  ;;  %v3746_v28 = vsel %vm973_vm5, %v1444_v21, 0.0 }
  0xf5   : > { %874 = vst.msk [vmem:[#allocation2 + $0x88] sm:$0xff] %vm858_vm1, %v840_v1  ;;  %v839_v48 = vmin.f32 %v807_v2, 6.0  ;;  %v810_v40 = vmax.f32 %v778_v3, 0.0  ;;  %v777_v12 = vadd.f32 %v3552_v50, %v738_v4  ;;  %v741_v13 = vmul.f32 %v3230_v5, %v3541_v46 }
  0xf6   : > { %v646_v9 = vpop.f32.mrf.mxu0  ;;  %v1560_v15 = vadd.f32 %v1544_v41, %v1524_v6  ;;  %v1340_v59 = vadd.f32 %v1324_v10, %v1304_v7  ;;  %v1545_v17 = vmul.f32 %v3720_v18, %v3746_v28  ;;  %v1033_v21 = vmul.f32 %v3674_v39, %v3560_v57 }
  0xf7   : > { %873 = vst.msk [vmem:[#allocation2 + $0x80] sm:$0xff] %vm858_vm1, %v839_v48  ;;  %v842_v23 = vmin.f32 %v810_v40, 6.0  ;;  %v809_v24 = vmax.f32 %v777_v12, 0.0  ;;  %v780_v26 = vadd.f32 %v3552_v50, %v741_v13  ;;  %v740_v30 = vmul.f32 %v3541_v46, %v646_v9  ;;  %v3786_v13 = vld [vmem:[#allocation2 + $0x30] sm:$0xff]  ;;  %v3788_v9 = vld [vmem:[#allocation2 + $0x38] sm:$0xff] }
  0xf8   : > { %v3233_v32 = vpop.f32.mrf.mxu0  ;;  %v1583_v33 = vmul.f32 %v3754_v14, %v1560_v15  ;;  %v1489_v38 = vadd.f32 %v1473_v22, %v1340_v59  ;;  %v1085_v44 = vadd.f32 %v3648_v19, %v1033_v21  ;;  %v1105_v39 = vmul.f32 %v3661_v27, %v3589_v16 }
  0xf9   : > { %876 = vst.msk [vmem:[#allocation2 + $0x98] sm:$0xff] %vm858_vm1, %v842_v23  ;;  %v841_v49 = vmin.f32 %v809_v24, 6.0  ;;  %v812_v51 = vmax.f32 %v780_v26, 0.0  ;;  %v779_v52 = vadd.f32 %v3552_v50, %v740_v30  ;;  %v743_v53 = vmul.f32 %v3233_v32, %v3541_v46 }
  0xfa   : > { %v656_v54 = vpop.f32.mrf.mxu0  ;;  %v1606_v41 = vadd.f32 %v3766_v31, %v1583_v33  ;;  %v1525_v56 = vadd.f32 %v1509_v42, %v1489_v38  ;;  %v1121_v1 = vadd.f32 %v1105_v39, %v1085_v44  ;;  %v1253_v22 = vmul.f32 %v3708_v20, %v3610_v45 }
  0xfb   : > { %875 = vst.msk [vmem:[#allocation2 + $0x90] sm:$0xff] %vm858_vm1, %v841_v49  ;;  %v844_v19 = vmin.f32 %v812_v51, 6.0  ;;  %v811_v27 = vmax.f32 %v779_v52, 0.0  ;;  %v782_v2 = vadd.f32 %v3552_v50, %v743_v53  ;;  %v742_v3 = vmul.f32 %v3541_v46, %v656_v54 }
  0xfc   : > { %v3236_v4 = vpop.f32.mrf.mxu0  ;;  %v1622_v5 = vmax.f32 %v1606_v41, 0.0  ;;  %v1561_v6 = vadd.f32 %v1545_v17, %v1525_v56  ;;  %v1269_v7 = vadd.f32 %v1253_v22, %v1121_v1  ;;  %v1289_v10 = vmul.f32 %v3665_v29, %v3613_v47 }
  0xfd   : > { %878 = vst.msk [vmem:[#allocation2 + $0xa8] sm:$0xff] %vm858_vm1, %v844_v19  ;;  %v843_v42 = vmin.f32 %v811_v27, 6.0  ;;  %v814_v48 = vmax.f32 %v782_v2, 0.0  ;;  %v781_v40 = vadd.f32 %v3552_v50, %v742_v3  ;;  %v745_v12 = vmul.f32 %v3236_v4, %v3541_v46 }
  0xfe   : > { %v1638_v15 = vmin.f32 %v1622_v5, 6.0  ;;  %v666_v59 = vpop.f32.mrf.mxu0  ;;  %v1584_v17 = vmul.f32 %v3754_v14, %v1561_v6  ;;  %v1305_v21 = vadd.f32 %v1289_v10, %v1269_v7  ;;  %v1325_v23 = vmul.f32 %v3701_v11, %v3624_v61 }
  0xff   : > { %877 = vst.msk [vmem:[#allocation2 + $0xa0] sm:$0xff] %vm858_vm1, %v843_v42  ;;  %v846_v24 = vmin.f32 %v814_v48, 6.0  ;;  %v813_v26 = vmax.f32 %v781_v40, 0.0  ;;  %v784_v30 = vadd.f32 %v3552_v50, %v745_v12  ;;  %v744_v32 = vmul.f32 %v3541_v46, %v666_v59 }
 0x100   : > { %3261 = vmatprep.mubr.msk.f32.mxu0 %vm858_vm1, %v1638_v15  ;;  %v1607_v33 = vadd.f32 %v3766_v31, %v1584_v17  ;;  %v3239_v38 = vpop.f32.mrf.mxu0  ;;  %v1341_v44 = vadd.f32 %v1325_v23, %v1305_v21  ;;  %v1373_v39 = vrot.slane %v3786_v13, 7  ;;  %v1381_v49 = vrot.slane %v3788_v9, 7 }
 0x101   : > { %880 = vst.msk [vmem:[#allocation2 + $0xb8] sm:$0xff] %vm858_vm1, %v846_v24  ;;  %v845_v51 = vmin.f32 %v813_v26, 6.0  ;;  %v816_v52 = vmax.f32 %v784_v30, 0.0  ;;  %v783_v53 = vadd.f32 %v3552_v50, %v744_v32  ;;  %v747_v54 = vmul.f32 %v3239_v38, %v3541_v46 }
 0x102   : > { %v1623_v41 = vmax.f32 %v1607_v33, 0.0  ;;  %v1397_v56 = vsel %vm935_vm2, %v1381_v49, %v1373_v39  ;;  %v1421_v1 = vrot.slane %v3786_v13, 1  ;;  %v1429_v22 = vrot.slane %v3788_v9, 1  ;;  %v676_v19 = vpop.f32.mrf.mxu0 }
 0x103   : > { %879 = vst.msk [vmem:[#allocation2 + $0xb0] sm:$0xff] %vm858_vm1, %v845_v51  ;;  %v848_v27 = vmin.f32 %v816_v52, 6.0  ;;  %v815_v2 = vmax.f32 %v783_v53, 0.0  ;;  %v786_v3 = vadd.f32 %v3552_v50, %v747_v54  ;;  %v3811_v4 = vsel %vm917_vm3, %v1397_v56, 0.0  ;;  %v3854_v54 = vld [vmem:[#allocation2 + $0x40] sm:$0xff] }
 0x104   : > { %v1639_v5 = vmin.f32 %v1623_v41, 6.0  ;;  %v3815_v6 = vsel %vm990_vm4, %v1421_v1, %v1429_v22  ;;  %v1474_v7 = vmul.f32 %v3627_v62, %v3811_v4  ;;  %v746_v48 = vmul.f32 %v3541_v46, %v676_v19  ;;  %v3242_v26 = vpop.f32.mrf.mxu0  ;;  %v3862_v19 = vld [vmem:[#allocation2 + $0x48] sm:$0xff] }
 0x105   : > { %882 = vst.msk [vmem:[#allocation2 + $0xc8] sm:$0xff] %vm858_vm1, %v848_v27  ;;  %v847_v10 = vmin.f32 %v815_v2, 6.0  ;;  %v818_v42 = vmax.f32 %v786_v3, 0.0  ;;  %v1070_v40 = vmul.f32 %v3621_v60, %v3571_v63  ;;  %v1510_v15 = vmul.f32 %v3630_v0, %v3786_v13 }
 0x106   : > { %3262 = vmatmul.mubr.msk.f32.vlgmr.msra.gmra.mxu0 %vm858_vm1, %v1639_v5  ;;  %v1490_v12 = vadd.f32 %v1474_v7, %v1341_v44  ;;  %v1034_v59 = vmul.f32 %v3655_v25, %v3560_v57  ;;  %v1106_v17 = vmul.f32 %v3735_v55, %v3589_v16  ;;  %v1546_v23 = vmul.f32 %v3720_v18, %v3815_v6 }
 0x107   : > { %881 = vst.msk [vmem:[#allocation2 + $0xc0] sm:$0xff] %vm858_vm1, %v847_v10  ;;  %v850_v21 = vmin.f32 %v818_v42, 6.0  ;;  %v785_v60 = vadd.f32 %v3552_v50, %v746_v48  ;;  %v1254_v24 = vmul.f32 %v3695_v8, %v3610_v45  ;;  %v3838_v25 = vsel %vm935_vm2, %v1373_v39, %v1381_v49 }
 0x108   : > { %v1526_v30 = vadd.f32 %v1510_v15, %v1490_v12  ;;  %v1086_v32 = vadd.f32 %v1070_v40, %v1034_v59  ;;  %v1445_v55 = vsel %vm990_vm4, %v1429_v22, %v1421_v1  ;;  %v1290_v38 = vmul.f32 %v3670_v37, %v3613_v47  ;;  %v686_v15 = vpop.f32.mrf.mxu0 }
 0x109   : > { %884 = vst.msk [vmem:[#allocation2 + $0xd8] sm:$0xff] %vm858_vm1, %v850_v21  ;;  %v817_v33 = vmax.f32 %v785_v60, 0.0  ;;  %v1326_v44 = vmul.f32 %v3746_v28, %v3624_v61  ;;  %v3849_v51 = vsel %vm973_vm5, %v1445_v55, 0.0  ;;  %v1475_v39 = vmul.f32 %v3627_v62, %v3838_v25 }
 0x10a   : > { %v1562_v52 = vadd.f32 %v1546_v23, %v1526_v30  ;;  %v1122_v53 = vadd.f32 %v1106_v17, %v1086_v32  ;;  %v749_v49 = vmul.f32 %v3242_v26, %v3541_v46  ;;  %v1511_v56 = vmul.f32 %v3630_v0, %v3788_v9 }
 0x10b   : > { %v849_v41 = vmin.f32 %v817_v33, 6.0  ;;  %v1035_v1 = vmul.f32 %v3708_v20, %v3560_v57  ;;  %v1071_v22 = vmul.f32 %v3665_v29, %v3571_v63  ;;  %v1547_v3 = vmul.f32 %v3720_v18, %v3849_v51 }
 0x10c   : > { %v1585_v27 = vmul.f32 %v3754_v14, %v1562_v52  ;;  %v1270_v2 = vadd.f32 %v1254_v24, %v1122_v53  ;;  %v788_v5 = vadd.f32 %v3552_v50, %v749_v49  ;;  %v1107_v10 = vmul.f32 %v3701_v11, %v3589_v16 }
 0x10d   : > { %883 = vst.msk [vmem:[#allocation2 + $0xd0] sm:$0xff] %vm858_vm1, %v849_v41  ;;  %v1087_v7 = vadd.f32 %v1071_v22, %v1035_v1  ;;  %v1255_v20 = vmul.f32 %v3811_v4, %v3610_v45  ;;  %v1374_v29 = vrot.slane %v3854_v54, 7  ;;  %v1382_v12 = vrot.slane %v3862_v19, 7 }
 0x10e   : > { %v1608_v42 = vadd.f32 %v3766_v31, %v1585_v27  ;;  %v1306_v48 = vadd.f32 %v1290_v38, %v1270_v2  ;;  %v820_v40 = vmax.f32 %v788_v5, 0.0  ;;  %v1291_v17 = vmul.f32 %v3786_v13, %v3613_v47 }
 0x10f   : > { %v1123_v59 = vadd.f32 %v1107_v10, %v1087_v7  ;;  %v1422_v21 = vrot.slane %v3854_v54, 1  ;;  %v1430_v11 = vrot.slane %v3862_v19, 1  ;;  %v1398_v26 = vsel %vm935_vm2, %v1382_v12, %v1374_v29 }
 0x110   : > { %v1624_v23 = vmax.f32 %v1608_v42, 0.0  ;;  %v1342_v60 = vadd.f32 %v1326_v44, %v1306_v48  ;;  %v852_v24 = vmin.f32 %v820_v40, 6.0  ;;  %v3884_v32 = vsel %vm917_vm3, %v1398_v26, 0.0  ;;  %v3245_v42 = vpop.f32.mrf.mxu0 }
 0x111   : > { %v1271_v30 = vadd.f32 %v1255_v20, %v1123_v59  ;;  %v3888_v55 = vsel %vm990_vm4, %v1422_v21, %v1430_v11  ;;  %v748_v33 = vmul.f32 %v3541_v46, %v686_v15  ;;  %v1327_v44 = vmul.f32 %v3815_v6, %v3624_v61 }
 0x112   : > { %v1640_v38 = vmin.f32 %v1624_v23, 6.0  ;;  %v1491_v52 = vadd.f32 %v1475_v39, %v1342_v60  ;;  %886 = vst.msk [vmem:[#allocation2 + $0xe8] sm:$0xff] %vm858_vm1, %v852_v24  ;;  %v1512_v53 = vmul.f32 %v3630_v0, %v3854_v54  ;;  %v1036_v1 = vmul.f32 %v3695_v8, %v3560_v57 }
 0x113   : > { %v1307_v49 = vadd.f32 %v1291_v17, %v1271_v30  ;;  %v787_v41 = vadd.f32 %v3552_v50, %v748_v33  ;;  %v1072_v22 = vmul.f32 %v3670_v37, %v3571_v63  ;;  %v1476_v27 = vmul.f32 %v3627_v62, %v3884_v32 }
 0x114   : > { %3264 = vmatprep.mubr.msk.f32.mxu1 %vm858_vm1, %v1640_v38  ;;  %v1527_v39 = vadd.f32 %v1511_v56, %v1491_v52  ;;  %v1548_v2 = vmul.f32 %v3720_v18, %v3888_v55  ;;  %v1108_v5 = vmul.f32 %v3746_v28, %v3589_v16  ;;  %v1256_v8 = vmul.f32 %v3838_v25, %v3610_v45 }
 0x115   : > { %v1343_v7 = vadd.f32 %v1327_v44, %v1307_v49  ;;  %v819_v10 = vmax.f32 %v787_v41, 0.0  ;;  %v1088_v20 = vadd.f32 %v1072_v22, %v1036_v1  ;;  %v1292_v56 = vmul.f32 %v3788_v9, %v3613_v47  ;;  %v3941_v44 = vld [vmem:[#allocation2 + $0x58] sm:$0xff] }
 0x116   : > { %v1563_v37 = vadd.f32 %v1547_v3, %v1527_v39  ;;  %v1328_v48 = vmul.f32 %v3849_v51, %v3624_v61  ;;  %v1446_v40 = vsel %vm990_vm4, %v1430_v11, %v1422_v21  ;;  %v3918_v17 = vsel %vm935_vm2, %v1374_v29, %v1382_v12  ;;  %v3933_v12 = vld [vmem:[#allocation2 + $0x50] sm:$0xff] }
 0x117   : > { %v1492_v15 = vadd.f32 %v1476_v27, %v1343_v7  ;;  %v851_v59 = vmin.f32 %v819_v10, 6.0  ;;  %v1124_v28 = vadd.f32 %v1108_v5, %v1088_v20  ;;  %v3923_v3 = vsel %vm973_vm5, %v1446_v40, 0.0  ;;  %v696_v10 = vpop.f32.mrf.mxu0 }
 0x118   : > { %v1586_v23 = vmul.f32 %v3754_v14, %v1563_v37  ;;  %v1513_v60 = vmul.f32 %v3630_v0, %v3862_v19  ;;  %v751_v24 = vmul.f32 %v3245_v42, %v3541_v46  ;;  %v1037_v11 = vmul.f32 %v3811_v4, %v3560_v57 }
 0x119   : > { %v1528_v26 = vadd.f32 %v1512_v53, %v1492_v15  ;;  %885 = vst.msk [vmem:[#allocation2 + $0xe0] sm:$0xff] %vm858_vm1, %v851_v59  ;;  %v1272_v21 = vadd.f32 %v1256_v8, %v1124_v28  ;;  %v1073_v29 = vmul.f32 %v3786_v13, %v3571_v63  ;;  %v1477_v33 = vmul.f32 %v3627_v62, %v3918_v17 }
 0x11a   : > { %v1609_v30 = vadd.f32 %v3766_v31, %v1586_v23  ;;  %v790_v38 = vadd.f32 %v3552_v50, %v751_v24  ;;  %v1109_v52 = vmul.f32 %v3815_v6, %v3589_v16  ;;  %v1257_v13 = vmul.f32 %v3884_v32, %v3610_v45 }
 0x11b   : > { %v1564_v53 = vadd.f32 %v1548_v2, %v1528_v26  ;;  %v1308_v49 = vadd.f32 %v1292_v56, %v1272_v21  ;;  %v1089_v4 = vadd.f32 %v1073_v29, %v1037_v11  ;;  %v1293_v22 = vmul.f32 %v3854_v54, %v3613_v47 }
 0x11c   : > { %v1625_v41 = vmax.f32 %v1609_v30, 0.0  ;;  %v822_v1 = vmax.f32 %v790_v38, 0.0  ;;  %v1375_v39 = vrot.slane %v3933_v12, 7  ;;  %v1383_v6 = vrot.slane %v3941_v44, 7 }
 0x11d   : > { %v1587_v27 = vmul.f32 %v3754_v14, %v1564_v53  ;;  %v1344_v5 = vadd.f32 %v1328_v48, %v1308_v49  ;;  %v1125_v7 = vadd.f32 %v1109_v52, %v1089_v4  ;;  %v1423_v8 = vrot.slane %v3933_v12, 1 }
 0x11e   : > { %v1641_v2 = vmin.f32 %v1625_v41, 6.0  ;;  %v854_v20 = vmin.f32 %v822_v1, 6.0  ;;  %v1431_v42 = vrot.slane %v3941_v44, 1  ;;  %v1399_v15 = vsel %vm935_vm2, %v1383_v6, %v1375_v39  ;;  %v3248_v1 = vpop.f32.mrf.mxu0 }
 0x11f   : > { %v1610_v37 = vadd.f32 %v3766_v31, %v1587_v27  ;;  %v1493_v56 = vadd.f32 %v1477_v33, %v1344_v5  ;;  %v1273_v40 = vadd.f32 %v1257_v13, %v1125_v7  ;;  %v1549_v48 = vmul.f32 %v3720_v18, %v3923_v3 }
 0x120   : > { %3265 = vmatmul.mubr.msk.f32.vlgmr.msra.gmra.mxu1 %vm858_vm1, %v1641_v2  ;;  %888 = vst.msk [vmem:[#allocation2 + $0xf8] sm:$0xff] %vm858_vm1, %v854_v20  ;;  %v1329_v59 = vmul.f32 %v3888_v55, %v3624_v61  ;;  %v3963_v28 = vsel %vm917_vm3, %v1399_v15, 0.0  ;;  %v750_v23 = vmul.f32 %v3541_v46, %v696_v10  ;;  %v3969_v11 = vsel %vm990_vm4, %v1423_v8, %v1431_v42  ;;  %v2653_v10 = vld [vmem:[%s5049_s7 + $0x8] sm:$0xff] }
 0x121   : > { %3286 = vmatpush3.msra.mxu1 %v3501_v34  ;;  %v1626_v24 = vmax.f32 %v1610_v37, 0.0  ;;  %v1529_v26 = vadd.f32 %v1513_v60, %v1493_v56  ;;  %v1309_v21 = vadd.f32 %v1293_v22, %v1273_v40  ;;  %v1478_v29 = vmul.f32 %v3627_v62, %v3963_v28  ;;  %v2652_v56 = vld [vmem:[%s5049_s7] sm:$0xff] }
 0x122   : > { %3287 = vmatprep.subr.mxu1 %v3509_v35  ;;  %v789_v30 = vadd.f32 %v3552_v50, %v750_v23  ;;  %v1038_v33 = vmul.f32 %v3838_v25, %v3560_v57  ;;  %v1074_v34 = vmul.f32 %v3788_v9, %v3571_v63  ;;  %v1110_v53 = vmul.f32 %v3849_v51, %v3589_v16  ;;  %v2654_v25 = vld [vmem:[%s5049_s7 + $0x10] sm:$0xff]  ;;  %v4024_v23 = vld [vmem:[#allocation2 + $0x60] sm:$0xff] }
 0x123   : > { %v1642_v38 = vmin.f32 %v1626_v24, 6.0  ;;  %v1565_v60 = vadd.f32 %v1549_v48, %v1529_v26  ;;  %3288 = vmatpush3.msra.mxu1 %v3509_v35  ;;  %v1345_v52 = vadd.f32 %v1329_v59, %v1309_v21  ;;  %v1258_v13 = vmul.f32 %v3918_v17, %v3610_v45  ;;  %v4026_v24 = vld [vmem:[#allocation2 + $0x68] sm:$0xff] }
 0x124   : > { %v821_v49 = vmax.f32 %v789_v30, 0.0  ;;  %v1090_v4 = vadd.f32 %v1074_v34, %v1038_v33  ;;  %3289 = vmatprep.subr.mxu1 %v3518_v36  ;;  %v1514_v41 = vmul.f32 %v3630_v0, %v3933_v12  ;;  %v3994_v51 = vsel %vm935_vm2, %v1375_v39, %v1383_v6 }
 0x125   : > { %3267 = vmatprep.mubr.msk.f32.mxu1 %vm858_vm1, %v1642_v38  ;;  %v1588_v9 = vmul.f32 %v3754_v14, %v1565_v60  ;;  %v1494_v35 = vadd.f32 %v1478_v29, %v1345_v52  ;;  %v1550_v22 = vmul.f32 %v3720_v18, %v3969_v11  ;;  %v1447_v7 = vsel %vm990_vm4, %v1431_v42, %v1423_v8 }
 0x126   : > { %v853_v27 = vmin.f32 %v821_v49, 6.0  ;;  %v1126_v5 = vadd.f32 %v1110_v53, %v1090_v4  ;;  %3290 = vmatpush3.msra.mxu1 %v3518_v36  ;;  %v1294_v39 = vmul.f32 %v3862_v19, %v3613_v47  ;;  %v1330_v6 = vmul.f32 %v3923_v3, %v3624_v61 }
 0x127   : > { %v1611_v2 = vadd.f32 %v3766_v31, %v1588_v9  ;;  %v1530_v20 = vadd.f32 %v1514_v41, %v1494_v35  ;;  %3291 = vmatprep.subr.mxu1 %v2654_v25  ;;  %v1479_v36 = vmul.f32 %v3627_v62, %v3994_v51  ;;  %v753_v8 = vmul.f32 %v3248_v1, %v3541_v46 }
 0x128   : > { %887 = vst.msk [vmem:[#allocation2 + $0xf0] sm:$0xff] %vm858_vm1, %v853_v27  ;;  %v1274_v37 = vadd.f32 %v1258_v13, %v1126_v5  ;;  %v1039_v42 = vmul.f32 %v3884_v32, %v3560_v57  ;;  %3292 = vmatpush3.msra.mxu1 %v2654_v25  ;;  %v4020_v48 = vsel %vm973_vm5, %v1447_v7, 0.0  ;;  %v1075_v59 = vmul.f32 %v3854_v54, %v3571_v63  ;;  %v706_v25 = vpop.f32.mrf.mxu0 }
 0x129   : > { %v1627_v40 = vmax.f32 %v1611_v2, 0.0  ;;  %v1566_v15 = vadd.f32 %v1550_v22, %v1530_v20  ;;  %3293 = vmatprep.subr.mxu1 %v2653_v10  ;;  %v1515_v26 = vmul.f32 %v3630_v0, %v3941_v44  ;;  %v792_v21 = vadd.f32 %v3552_v50, %v753_v8 }
 0x12a   : > { %v1310_v32 = vadd.f32 %v1294_v39, %v1274_v37  ;;  %v1111_v29 = vmul.f32 %v3888_v55, %v3589_v16  ;;  %3294 = vmatpush3.msra.mxu1 %v2653_v10  ;;  %v1091_v34 = vadd.f32 %v1075_v59, %v1039_v42  ;;  %v1259_v54 = vmul.f32 %v3963_v28, %v3610_v45 }
 0x12b   : > { %v1643_v30 = vmin.f32 %v1627_v40, 6.0  ;;  %v1589_v33 = vmul.f32 %v3754_v14, %v1566_v15  ;;  %3295 = vmatprep.subr.mxu1 %v2652_v56  ;;  %v824_v60 = vmax.f32 %v792_v21, 0.0  ;;  %v1376_v52 = vrot.slane %v4024_v23, 7 }
 0x12c   : > { %v1346_v38 = vadd.f32 %v1330_v6, %v1310_v32  ;;  %v1384_v53 = vrot.slane %v4026_v24, 7  ;;  %3296 = vmatpush3.msra.mxu1 %v2652_v56  ;;  %v1551_v49 = vmul.f32 %v3720_v18, %v4020_v48  ;;  %v1127_v4 = vadd.f32 %v1111_v29, %v1091_v34 }
 0x12d   : > { %3268 = vmatmul.mubr.msk.f32.gmra.mxu1 %vm858_vm1, %v1643_v30  ;;  %v1612_v55 = vadd.f32 %v3766_v31, %v1589_v33  ;;  %v1424_v13 = vrot.slane %v4024_v23, 1  ;;  %v856_v35 = vmin.f32 %v824_v60, 6.0  ;;  %v1432_v1 = vrot.slane %v4026_v24, 1 }
 0x12e   : > { %v1495_v9 = vadd.f32 %v1479_v36, %v1346_v38  ;;  %v1400_v41 = vsel %vm935_vm2, %v1384_v53, %v1376_v52  ;;  %v1275_v27 = vadd.f32 %v1259_v54, %v1127_v4  ;;  %v1295_v5 = vmul.f32 %v3933_v12, %v3613_v47 }
 0x12f   : > { %v1628_v22 = vmax.f32 %v1612_v55, 0.0  ;;  %v1331_v7 = vmul.f32 %v3969_v11, %v3624_v61  ;;  %890 = vst.msk [vmem:[#allocation2 + $0x108] sm:$0xff] %vm858_vm1, %v856_v35  ;;  %v4053_v2 = vsel %vm917_vm3, %v1400_v41, 0.0  ;;  %v4057_v20 = vsel %vm990_vm4, %v1424_v13, %v1432_v1 }
 0x130   : > { %v1531_v10 = vadd.f32 %v1515_v26, %v1495_v9  ;;  %v752_v39 = vmul.f32 %v3541_v46, %v706_v25  ;;  %v1311_v37 = vadd.f32 %v1295_v5, %v1275_v27  ;;  %v1040_v36 = vmul.f32 %v3918_v17, %v3560_v57 }
 0x131   : > { %v1644_v6 = vmin.f32 %v1628_v22, 6.0  ;;  %v1076_v8 = vmul.f32 %v3862_v19, %v3571_v63  ;;  %v1516_v56 = vmul.f32 %v3630_v0, %v4024_v23  ;;  %v1112_v15 = vmul.f32 %v3923_v3, %v3589_v16 }
 0x132   : > { %v1567_v42 = vadd.f32 %v1551_v49, %v1531_v10  ;;  %v791_v40 = vadd.f32 %v3552_v50, %v752_v39  ;;  %v1347_v46 = vadd.f32 %v1331_v7, %v1311_v37  ;;  %v1480_v59 = vmul.f32 %v3627_v62, %v4053_v2 }
 0x133   : > { %3270 = vmatprep.mubr.msk.f32.mxu1 %vm858_vm1, %v1644_v6  ;;  %v1092_v32 = vadd.f32 %v1076_v8, %v1040_v36  ;;  %v1260_v17 = vmul.f32 %v3994_v51, %v3610_v45  ;;  %v1552_v26 = vmul.f32 %v3720_v18, %v4057_v20  ;;  %v1448_v50 = vsel %vm990_vm4, %v1432_v1, %v1424_v13 }
 0x134   : > { %v1590_v19 = vmul.f32 %v3754_v14, %v1567_v42  ;;  %v823_v21 = vmax.f32 %v791_v40, 0.0  ;;  %v1496_v3 = vadd.f32 %v1480_v59, %v1347_v46  ;;  %v1296_v30 = vmul.f32 %v3941_v44, %v3613_v47 }
 0x135   : > { %v1128_v29 = vadd.f32 %v1112_v15, %v1092_v32  ;;  %v4083_v33 = vsel %vm935_vm2, %v1376_v52, %v1384_v53  ;;  %v1332_v38 = vmul.f32 %v4020_v48, %v3624_v61  ;;  %v4090_v60 = vsel %vm973_vm5, %v1448_v50, 0.0  ;;  %v4096_v52 = vld [vmem:[#allocation2 + $0x70] sm:$0xff]  ;;  %v4098_v53 = vld [vmem:[#allocation2 + $0x78] sm:$0xff] }
 0x136   : > { %v1613_v34 = vadd.f32 %v3766_v31, %v1590_v19  ;;  %v855_v54 = vmin.f32 %v823_v21, 6.0  ;;  %v1532_v55 = vadd.f32 %v1516_v56, %v1496_v3  ;;  %v1041_v4 = vmul.f32 %v3963_v28, %v3560_v57 }
 0x137   : > { %v1276_v49 = vadd.f32 %v1260_v17, %v1128_v29  ;;  %v1077_v13 = vmul.f32 %v3933_v12, %v3571_v63  ;;  %v1481_v9 = vmul.f32 %v3627_v62, %v4083_v33  ;;  %v1517_v35 = vmul.f32 %v3630_v0, %v4026_v24 }
 0x138   : > { %v1629_v25 = vmax.f32 %v1613_v34, 0.0  ;;  %889 = vst.msk [vmem:[#allocation2 + $0x100] sm:$0xff] %vm858_vm1, %v855_v54  ;;  %v1113_v41 = vmul.f32 %v3969_v11, %v3589_v16  ;;  %v1568_v28 = vadd.f32 %v1552_v26, %v1532_v55  ;;  %v1261_v12 = vmul.f32 %v4053_v2, %v3610_v45 }
 0x139   : > { %v1312_v1 = vadd.f32 %v1296_v30, %v1276_v49  ;;  %v1093_v22 = vadd.f32 %v1077_v13, %v1041_v4  ;;  %v1297_v5 = vmul.f32 %v4024_v23, %v3613_v47  ;;  %v1377_v7 = vrot.slane %v4096_v52, 7 }
 0x13a   : > { %v1645_v27 = vmin.f32 %v1629_v25, 6.0  ;;  %v1385_v10 = vrot.slane %v4098_v53, 7  ;;  %v1591_v39 = vmul.f32 %v3754_v14, %v1568_v28  ;;  %v1425_v11 = vrot.slane %v4096_v52, 1 }
 0x13b   : > { %v1348_v6 = vadd.f32 %v1332_v38, %v1312_v1  ;;  %v1129_v37 = vadd.f32 %v1113_v41, %v1093_v22  ;;  %v1433_v8 = vrot.slane %v4098_v53, 1  ;;  %v1042_v42 = vmul.f32 %v3994_v51, %v3560_v57  ;;  %v4160_v1 = vld [vmem:[#allocation2 + $0x80] sm:$0xff] }
 0x13c   : > { %3271 = vmatmul.mubr.msk.f32.gmra.mxu1 %vm858_vm1, %v1645_v27  ;;  %v1401_v36 = vsel %vm935_vm2, %v1385_v10, %v1377_v7  ;;  %v1078_v56 = vmul.f32 %v3941_v44, %v3571_v63  ;;  %v1614_v40 = vadd.f32 %v3766_v31, %v1591_v39  ;;  %v1553_v32 = vmul.f32 %v3720_v18, %v4090_v60 }
 0x13d   : > { %v1497_v15 = vadd.f32 %v1481_v9, %v1348_v6  ;;  %v1277_v46 = vadd.f32 %v1261_v12, %v1129_v37  ;;  %v4126_v59 = vsel %vm917_vm3, %v1401_v36, 0.0  ;;  %v1333_v17 = vmul.f32 %v4057_v20, %v3624_v61 }
 0x13e   : > { %v1094_v19 = vadd.f32 %v1078_v56, %v1042_v42  ;;  %v1114_v51 = vmul.f32 %v4020_v48, %v3589_v16  ;;  %v1630_v26 = vmax.f32 %v1614_v40, 0.0  ;;  %v4136_v50 = vsel %vm990_vm4, %v1425_v11, %v1433_v8 }
 0x13f   : > { %v1533_v44 = vadd.f32 %v1517_v35, %v1497_v15  ;;  %v1313_v21 = vadd.f32 %v1297_v5, %v1277_v46  ;;  %v1482_v3 = vmul.f32 %v3627_v62, %v4126_v59  ;;  %v1518_v29 = vmul.f32 %v3630_v0, %v4096_v52 }
 0x140   : > { %v1130_v30 = vadd.f32 %v1114_v51, %v1094_v19  ;;  %v1262_v34 = vmul.f32 %v4083_v33, %v3610_v45  ;;  %v1646_v54 = vmin.f32 %v1630_v26, 6.0  ;;  %v4146_v55 = vsel %vm935_vm2, %v1377_v7, %v1385_v10  ;;  %v4170_v7 = vld [vmem:[#allocation2 + $0x88] sm:$0xff] }
 0x141   : > { %v1569_v38 = vadd.f32 %v1553_v32, %v1533_v44  ;;  %v1349_v48 = vadd.f32 %v1333_v17, %v1313_v21  ;;  %v1554_v49 = vmul.f32 %v3720_v18, %v4136_v50  ;;  %v1298_v13 = vmul.f32 %v4026_v24, %v3613_v47 }
 0x142   : > { %v1278_v4 = vadd.f32 %v1262_v34, %v1130_v30  ;;  %v1449_v25 = vsel %vm990_vm4, %v1433_v8, %v1425_v11  ;;  %3273 = vmatprep.mubr.msk.f32.mxu1 %vm858_vm1, %v1646_v54  ;;  %v1334_v41 = vmul.f32 %v4090_v60, %v3624_v61  ;;  %v1043_v28 = vmul.f32 %v4053_v2, %v3560_v57 }
 0x143   : > { %v1592_v9 = vmul.f32 %v3754_v14, %v1569_v38  ;;  %v1498_v35 = vadd.f32 %v1482_v3, %v1349_v48  ;;  %v4164_v12 = vsel %vm973_vm5, %v1449_v25, 0.0  ;;  %v1483_v27 = vmul.f32 %v3627_v62, %v4146_v55 }
 0x144   : > { %v1314_v22 = vadd.f32 %v1298_v13, %v1278_v4  ;;  %v1079_v5 = vmul.f32 %v4024_v23, %v3571_v63  ;;  %v1519_v2 = vmul.f32 %v3630_v0, %v4098_v53  ;;  %v1115_v6 = vmul.f32 %v4057_v20, %v3589_v16 }
 0x145   : > { %v1615_v10 = vadd.f32 %v3766_v31, %v1592_v9  ;;  %v1534_v39 = vadd.f32 %v1518_v29, %v1498_v35  ;;  %v1263_v36 = vmul.f32 %v4126_v59, %v3610_v45  ;;  %v1378_v8 = vrot.slane %v4160_v1, 7 }
 0x146   : > { %v1350_v37 = vadd.f32 %v1334_v41, %v1314_v22  ;;  %v1095_v11 = vadd.f32 %v1079_v5, %v1043_v28  ;;  %v1555_v56 = vmul.f32 %v3720_v18, %v4164_v12  ;;  %v1386_v40 = vrot.slane %v4170_v7, 7 }
 0x147   : > { %v1631_v42 = vmax.f32 %v1615_v10, 0.0  ;;  %v1570_v23 = vadd.f32 %v1554_v49, %v1534_v39  ;;  %v1299_v32 = vmul.f32 %v4096_v52, %v3613_v47  ;;  %v1426_v20 = vrot.slane %v4160_v1, 1 }
 0x148   : > { %v1499_v15 = vadd.f32 %v1483_v27, %v1350_v37  ;;  %v1131_v46 = vadd.f32 %v1115_v6, %v1095_v11  ;;  %v1402_v51 = vsel %vm935_vm2, %v1386_v40, %v1378_v8  ;;  %v1044_v26 = vmul.f32 %v4083_v33, %v3560_v57  ;;  %v4232_v11 = vld [vmem:[#allocation2 + $0x90] sm:$0xff] }
 0x149   : > { %v1647_v17 = vmin.f32 %v1631_v42, 6.0  ;;  %v1593_v19 = vmul.f32 %v3754_v14, %v1570_v23  ;;  %v4193_v3 = vsel %vm917_vm3, %v1402_v51, 0.0  ;;  %v1434_v29 = vrot.slane %v4170_v7, 1 }
 0x14a   : > { %v1535_v44 = vadd.f32 %v1519_v2, %v1499_v15  ;;  %v1279_v21 = vadd.f32 %v1263_v36, %v1131_v46  ;;  %v1335_v34 = vmul.f32 %v4136_v50, %v3624_v61  ;;  %v1520_v54 = vmul.f32 %v3630_v0, %v4160_v1 }
 0x14b   : > { %3274 = vmatmul.mubr.msk.f32.gmra.mxu1 %vm858_vm1, %v1647_v17  ;;  %v1616_v30 = vadd.f32 %v3766_v31, %v1593_v19  ;;  %v1080_v33 = vmul.f32 %v4026_v24, %v3571_v63  ;;  %v4206_v49 = vsel %vm990_vm4, %v1426_v20, %v1434_v29  ;;  %v1116_v4 = vmul.f32 %v4090_v60, %v3589_v16 }
 0x14c   : > { %v1571_v38 = vadd.f32 %v1555_v56, %v1535_v44  ;;  %v1315_v48 = vadd.f32 %v1299_v32, %v1279_v21  ;;  %v1484_v25 = vmul.f32 %v3627_v62, %v4193_v3  ;;  %v1264_v35 = vmul.f32 %v4146_v55, %v3610_v45  ;;  %v4241_v56 = vld [vmem:[#allocation2 + $0x98] sm:$0xff] }
 0x14d   : > { %v1632_v13 = vmax.f32 %v1616_v30, 0.0  ;;  %v1096_v9 = vadd.f32 %v1080_v33, %v1044_v26  ;;  %v4217_v28 = vsel %vm935_vm2, %v1378_v8, %v1386_v40  ;;  %v1450_v22 = vsel %vm990_vm4, %v1434_v29, %v1426_v20 }
 0x14e   : > { %v1594_v41 = vmul.f32 %v3754_v14, %v1571_v38  ;;  %v1351_v24 = vadd.f32 %v1335_v34, %v1315_v48  ;;  %v1556_v60 = vmul.f32 %v3720_v18, %v4206_v49  ;;  %v1300_v10 = vmul.f32 %v4098_v53, %v3613_v47 }
 0x14f   : > { %v1648_v27 = vmin.f32 %v1632_v13, 6.0  ;;  %v1132_v5 = vadd.f32 %v1116_v4, %v1096_v9  ;;  %v1336_v6 = vmul.f32 %v4164_v12, %v3624_v61  ;;  %v4230_v37 = vsel %vm973_vm5, %v1450_v22, 0.0 }
 0x150   : > { %v1617_v39 = vadd.f32 %v3766_v31, %v1594_v41  ;;  %v1500_v2 = vadd.f32 %v1484_v25, %v1351_v24  ;;  %v1485_v8 = vmul.f32 %v3627_v62, %v4217_v28  ;;  %v1045_v42 = vmul.f32 %v4126_v59, %v3560_v57 }
 0x151   : > { %3276 = vmatprep.mubr.msk.f32.mxu1 %vm858_vm1, %v1648_v27  ;;  %v1280_v36 = vadd.f32 %v1264_v35, %v1132_v5  ;;  %v1081_v23 = vmul.f32 %v4096_v52, %v3571_v63  ;;  %v1521_v46 = vmul.f32 %v3630_v0, %v4170_v7  ;;  %v1117_v32 = vmul.f32 %v4136_v50, %v3589_v16 }
 0x152   : > { %v1633_v40 = vmax.f32 %v1617_v39, 0.0  ;;  %v1536_v15 = vadd.f32 %v1520_v54, %v1500_v2  ;;  %v1265_v19 = vmul.f32 %v4193_v3, %v3610_v45  ;;  %v1379_v59 = vrot.slane %v4232_v11, 7 }
 0x153   : > { %v1316_v20 = vadd.f32 %v1300_v10, %v1280_v36  ;;  %v1097_v17 = vadd.f32 %v1081_v23, %v1045_v42  ;;  %v1387_v52 = vrot.slane %v4241_v56, 7  ;;  %v1427_v44 = vrot.slane %v4232_v11, 1 }
 0x154   : > { %v1649_v51 = vmin.f32 %v1633_v40, 6.0  ;;  %v1572_v26 = vadd.f32 %v1556_v60, %v1536_v15  ;;  %v1557_v29 = vmul.f32 %v3720_v18, %v4230_v37  ;;  %v1435_v50 = vrot.slane %v4241_v56, 1 }
 0x155   : > { %v1352_v21 = vadd.f32 %v1336_v6, %v1316_v20  ;;  %v1133_v30 = vadd.f32 %v1117_v32, %v1097_v17  ;;  %v1403_v54 = vsel %vm935_vm2, %v1387_v52, %v1379_v59  ;;  %v1046_v33 = vmul.f32 %v4146_v55, %v3560_v57 }
 0x156   : > { %3277 = vmatmul.mubr.msk.f32.gmra.mxu1 %vm858_vm1, %v1649_v51  ;;  %v1595_v34 = vmul.f32 %v3754_v14, %v1572_v26  ;;  %v1082_v38 = vmul.f32 %v4098_v53, %v3571_v63  ;;  %v1301_v13 = vmul.f32 %v4160_v1, %v3613_v47  ;;  %v4267_v25 = vsel %vm917_vm3, %v1403_v54, 0.0 }
 0x157   : > { %v1501_v48 = vadd.f32 %v1485_v8, %v1352_v21  ;;  %v1281_v4 = vadd.f32 %v1265_v19, %v1133_v30  ;;  %v1337_v35 = vmul.f32 %v4206_v49, %v3624_v61  ;;  %v4274_v55 = vsel %vm990_vm4, %v1427_v44, %v1435_v50  ;;  %v4320_v30 = vld [vmem:[#allocation2 + $0xa8] sm:$0xff] }
 0x158   : > { %v1618_v9 = vadd.f32 %v3766_v31, %v1595_v34  ;;  %v1098_v41 = vadd.f32 %v1082_v38, %v1046_v33  ;;  %v1118_v22 = vmul.f32 %v4164_v12, %v3589_v16  ;;  %v1266_v27 = vmul.f32 %v4217_v28, %v3610_v45 }
 0x159   : > { %v1537_v53 = vadd.f32 %v1521_v46, %v1501_v48  ;;  %v1317_v24 = vadd.f32 %v1301_v13, %v1281_v4  ;;  %v1486_v5 = vmul.f32 %v3627_v62, %v4267_v25  ;;  %v1522_v10 = vmul.f32 %v3630_v0, %v4232_v11 }
 0x15a   : > { %v1634_v60 = vmax.f32 %v1618_v9, 0.0  ;;  %v4286_v39 = vsel %vm935_vm2, %v1379_v59, %v1387_v52  ;;  %v1134_v36 = vadd.f32 %v1118_v22, %v1098_v41  ;;  %v1451_v12 = vsel %vm990_vm4, %v1435_v50, %v1427_v44  ;;  %v4314_v44 = vld [vmem:[%s5046_s4 + $0x8] ss:$0 sm:$0xff] }
 0x15b   : > { %v1573_v2 = vadd.f32 %v1557_v29, %v1537_v53  ;;  %v1353_v6 = vadd.f32 %v1337_v35, %v1317_v24  ;;  %v1558_v42 = vmul.f32 %v3720_v18, %v4274_v55  ;;  %v1302_v23 = vmul.f32 %v4170_v7, %v3613_v47  ;;  %v4318_v29 = vld [vmem:[#allocation2 + $0xa0] sm:$0xff] }
 0x15c   : > { %v1650_v8 = vmin.f32 %v1634_v60, 6.0  ;;  %v4296_v40 = vsel %vm973_vm5, %v1451_v12, 0.0  ;;  %v1282_v32 = vadd.f32 %v1266_v27, %v1134_v36  ;;  %v1338_v20 = vmul.f32 %v4230_v37, %v3624_v61 }
 0x15d   : > { %v1596_v15 = vmul.f32 %v3754_v14, %v1573_v2  ;;  %v1502_v46 = vadd.f32 %v1486_v5, %v1353_v6  ;;  %v1487_v17 = vmul.f32 %v3627_v62, %v4286_v39  ;;  %v1523_v18 = vmul.f32 %v3630_v0, %v4241_v56 }
 0x15e   : > { %3279 = vmatprep.mubr.msk.f32.mxu1 %vm858_vm1, %v1650_v8  ;;  %v2060_v19 = vmul.f32 %v4193_v3, %v3560_v57  ;;  %v2092_v59 = vmul.f32 %v4160_v1, %v3571_v63  ;;  %v1318_v52 = vadd.f32 %v1302_v23, %v1282_v32  ;;  %v1559_v21 = vmul.f32 %v4314_v44, %v4296_v40 }
 0x15f   : > { %v1619_v51 = vadd.f32 %v3766_v31, %v1596_v15  ;;  %v1538_v26 = vadd.f32 %v1522_v10, %v1502_v46  ;;  %v2093_v3 = vmul.f32 %v4170_v7, %v3571_v63  ;;  %v2124_v50 = vmul.f32 %v4206_v49, %v3589_v16 }
 0x160   : > { %v2108_v1 = vadd.f32 %v2092_v59, %v2060_v19  ;;  %v2269_v34 = vmul.f32 %v4267_v25, %v3610_v45  ;;  %v1354_v38 = vadd.f32 %v1338_v20, %v1318_v52  ;;  %v2270_v48 = vmul.f32 %v4286_v39, %v3610_v45  ;;  %v3343_v19 = vld [vmem:[%s5047_s5] ss:$0 sm:$0xff] }
 0x161   : > { %v1635_v54 = vmax.f32 %v1619_v51, 0.0  ;;  %v1574_v33 = vadd.f32 %v1558_v42, %v1538_v26  ;;  %v2382_v13 = vrot.slane %v4318_v29, 7  ;;  %v2390_v9 = vrot.slane %v4320_v30, 7 }
 0x162   : > { %v2140_v4 = vadd.f32 %v2124_v50, %v2108_v1  ;;  %v2430_v7 = vrot.slane %v4318_v29, 1  ;;  %v1503_v49 = vadd.f32 %v1487_v17, %v1354_v38  ;;  %v2301_v53 = vmul.f32 %v4232_v11, %v3613_v47  ;;  %v4380_v1 = vld [vmem:[#allocation2 + $0xb0] sm:$0xff]  ;;  %v4382_v50 = vld [vmem:[#allocation2 + $0xb8] sm:$0xff] }
 0x163   : > { %v1651_v35 = vmin.f32 %v1635_v54, 6.0  ;;  %v1597_v41 = vmul.f32 %v3754_v14, %v1574_v33  ;;  %v2302_v22 = vmul.f32 %v4241_v56, %v3613_v47  ;;  %v2406_v27 = vsel %vm935_vm2, %v2390_v9, %v2382_v13 }
 0x164   : > { %v2285_v24 = vadd.f32 %v2269_v34, %v2140_v4  ;;  %v2438_v60 = vrot.slane %v4320_v30, 1  ;;  %v1539_v10 = vadd.f32 %v1523_v18, %v1503_v49  ;;  %v4345_v14 = vsel %vm935_vm2, %v2382_v13, %v2390_v9  ;;  %v3344_v34 = vld [vmem:[%s5048_s6] ss:$0 sm:$0xff] }
 0x165   : > { %3280 = vmatmul.mubr.msk.f32.gmra.mxu1 %vm858_vm1, %v1651_v35  ;;  %v1620_v5 = vadd.f32 %v3766_v31, %v1597_v41  ;;  %v4349_v2 = vsel %vm917_vm3, %v2406_v27, 0.0  ;;  %v2333_v36 = vmul.f32 %v4274_v55, %v3624_v61  ;;  %v2510_v31 = vmul.f32 %v4318_v29, %v3630_v0 }
 0x166   : > { %v2317_v6 = vadd.f32 %v2301_v53, %v2285_v24  ;;  %v4355_v12 = vsel %vm990_vm4, %v2430_v7, %v2438_v60  ;;  %v1575_v42 = vadd.f32 %v1559_v21, %v1539_v10  ;;  %v2454_v23 = vsel %vm990_vm4, %v2438_v60, %v2430_v7  ;;  %v4401_v7 = vld [vmem:[%s5047_s5] ss:$0 sm:$0xff] }
 0x167   : > { %v1636_v8 = vmax.f32 %v1620_v5, 0.0  ;;  %v2478_v15 = vmul.f32 %v4349_v2, %v3627_v62  ;;  %v2479_v32 = vmul.f32 %v4345_v14, %v3627_v62  ;;  %v2061_v20 = vmul.f32 %v4217_v28, %v3560_v57  ;;  %v4411_v5 = vld [vmem:[%s5048_s6] ss:$0 sm:$0xff] }
 0x168   : > { %v2349_v46 = vadd.f32 %v2333_v36, %v2317_v6  ;;  %v2125_v17 = vmul.f32 %v4230_v37, %v3589_v16  ;;  %v1598_v59 = vmul.f32 %v3343_v19, %v1575_v42  ;;  %v2511_v51 = vmul.f32 %v4320_v30, %v3630_v0 }
 0x169   : > { %v1652_v18 = vmin.f32 %v1636_v8, 6.0  ;;  %v2062_v26 = vmul.f32 %v4267_v25, %v3560_v57  ;;  %v2542_v21 = vmul.f32 %v4314_v44, %v4355_v12  ;;  %v2109_v28 = vadd.f32 %v2093_v3, %v2061_v20 }
 0x16a   : > { %v2494_v52 = vadd.f32 %v2478_v15, %v2349_v46  ;;  %v2094_v37 = vmul.f32 %v4232_v11, %v3571_v63  ;;  %v1621_v54 = vadd.f32 %v3344_v34, %v1598_v59  ;;  %v2334_v25 = vmul.f32 %v4296_v40, %v3624_v61 }
 0x16b   : > { %3282 = vmatprep.mubr.msk.f32.mxu1 %vm858_vm1, %v1652_v18  ;;  %v4392_v3 = vsel %vm973_vm5, %v2454_v23, 0.0  ;;  %v2126_v11 = vmul.f32 %v4274_v55, %v3589_v16  ;;  %v2141_v38 = vadd.f32 %v2125_v17, %v2109_v28  ;;  %v2271_v13 = vmul.f32 %v4349_v2, %v3610_v45 }
 0x16c   : > { %v2526_v33 = vadd.f32 %v2510_v31, %v2494_v52  ;;  %v2110_v4 = vadd.f32 %v2094_v37, %v2062_v26  ;;  %v1637_v9 = vmax.f32 %v1621_v54, 0.0  ;;  %v2303_v35 = vmul.f32 %v4318_v29, %v3613_v47 }
 0x16d   : > { %v2383_v41 = vrot.slane %v4380_v1, 7  ;;  %v2391_v49 = vrot.slane %v4382_v50, 7  ;;  %v2286_v53 = vadd.f32 %v2270_v48, %v2141_v38  ;;  %v2431_v27 = vrot.slane %v4380_v1, 1 }
 0x16e   : > { %v2558_v55 = vadd.f32 %v2542_v21, %v2526_v33  ;;  %v2142_v24 = vadd.f32 %v2126_v11, %v2110_v4  ;;  %v1653_v60 = vmin.f32 %v1637_v9, 6.0  ;;  %v2439_v6 = vrot.slane %v4382_v50, 1 }
 0x16f   : > { %v2407_v10 = vsel %vm935_vm2, %v2391_v49, %v2383_v41  ;;  %v2063_v36 = vmul.f32 %v4286_v39, %v3560_v57  ;;  %v2318_v48 = vadd.f32 %v2302_v22, %v2286_v53  ;;  %v2543_v23 = vmul.f32 %v4314_v44, %v4392_v3 }
 0x170   : > { %v2581_v31 = vmul.f32 %v4401_v7, %v2558_v55  ;;  %v2287_v8 = vadd.f32 %v2271_v13, %v2142_v24  ;;  %v4421_v42 = vsel %vm917_vm3, %v2407_v10, 0.0  ;;  %3283 = vmatmul.mubr.msk.f32.gmra.mxu1 %vm858_vm1, %v1653_v60  ;;  %v2335_v15 = vmul.f32 %v4355_v12, %v3624_v61 }
 0x171   : > { %v2095_v46 = vmul.f32 %v4241_v56, %v3571_v63  ;;  %v2127_v39 = vmul.f32 %v4296_v40, %v3589_v16  ;;  %v2350_v20 = vadd.f32 %v2334_v25, %v2318_v48  ;;  %v4435_v18 = vsel %vm990_vm4, %v2431_v27, %v2439_v6 }
 0x172   : > { %v2604_v22 = vadd.f32 %v4411_v5, %v2581_v31  ;;  %v2319_v17 = vadd.f32 %v2303_v35, %v2287_v8  ;;  %v2480_v19 = vmul.f32 %v4421_v42, %v3627_v62  ;;  %v2512_v59 = vmul.f32 %v4380_v1, %v3630_v0 }
 0x173   : > { %v2111_v26 = vadd.f32 %v2095_v46, %v2063_v36  ;;  %v2272_v56 = vmul.f32 %v4345_v14, %v3610_v45  ;;  %v2495_v40 = vadd.f32 %v2479_v32, %v2350_v20  ;;  %v4445_v28 = vsel %vm935_vm2, %v2383_v41, %v2391_v49  ;;  %v4461_v41 = vld [vmem:[#allocation2 + $0xc0] sm:$0xff]  ;;  %v4463_v49 = vld [vmem:[#allocation2 + $0xc8] sm:$0xff] }
 0x174   : > { %v2620_v52 = vmax.f32 %v2604_v22, 0.0  ;;  %v2351_v21 = vadd.f32 %v2335_v15, %v2319_v17  ;;  %v2544_v37 = vmul.f32 %v4314_v44, %v4435_v18  ;;  %v2304_v54 = vmul.f32 %v4320_v30, %v3613_v47 }
 0x175   : > { %v2143_v34 = vadd.f32 %v2127_v39, %v2111_v26  ;;  %v2455_v25 = vsel %vm990_vm4, %v2439_v6, %v2431_v27  ;;  %v2527_v33 = vadd.f32 %v2511_v51, %v2495_v40  ;;  %v2336_v32 = vmul.f32 %v4392_v3, %v3624_v61 }
 0x176   : > { %v2636_v11 = vmin.f32 %v2620_v52, 6.0  ;;  %v2496_v38 = vadd.f32 %v2480_v19, %v2351_v21  ;;  %v2481_v13 = vmul.f32 %v4445_v28, %v3627_v62  ;;  %v2064_v9 = vmul.f32 %v4349_v2, %v3560_v57 }
 0x177   : > { %v2288_v4 = vadd.f32 %v2272_v56, %v2143_v34  ;;  %v2096_v35 = vmul.f32 %v4318_v29, %v3571_v63  ;;  %v2559_v51 = vadd.f32 %v2543_v23, %v2527_v33  ;;  %v4468_v53 = vsel %vm973_vm5, %v2455_v25, 0.0 }
 0x178   : > { %3297 = vmatprep.mubr.msk.f32.mxu1 %vm858_vm1, %v2636_v11  ;;  %v2528_v55 = vadd.f32 %v2512_v59, %v2496_v38  ;;  %v2513_v24 = vmul.f32 %v4382_v50, %v3630_v0  ;;  %v2128_v29 = vmul.f32 %v4355_v12, %v3589_v16  ;;  %v2273_v60 = vmul.f32 %v4421_v42, %v3610_v45 }
 0x179   : > { %v2320_v27 = vadd.f32 %v2304_v54, %v2288_v4  ;;  %v2112_v2 = vadd.f32 %v2096_v35, %v2064_v9  ;;  %v2582_v10 = vmul.f32 %v4401_v7, %v2559_v51  ;;  %v2384_v36 = vrot.slane %v4461_v41, 7 }
 0x17a   : > { %v2560_v6 = vadd.f32 %v2544_v37, %v2528_v55  ;;  %v2392_v31 = vrot.slane %v4463_v49, 7  ;;  %v2545_v8 = vmul.f32 %v4314_v44, %v4468_v53  ;;  %v2432_v15 = vrot.slane %v4461_v41, 1 }
 0x17b   : > { %v2352_v48 = vadd.f32 %v2336_v32, %v2320_v27  ;;  %v2144_v23 = vadd.f32 %v2128_v29, %v2112_v2  ;;  %v2605_v46 = vadd.f32 %v4411_v5, %v2582_v10  ;;  %v2440_v22 = vrot.slane %v4463_v49, 1 }
 0x17c   : > { %v2583_v12 = vmul.f32 %v4401_v7, %v2560_v6  ;;  %v2408_v39 = vsel %vm935_vm2, %v2392_v31, %v2384_v36  ;;  %v2305_v19 = vmul.f32 %v4380_v1, %v3613_v47  ;;  %v2337_v52 = vmul.f32 %v4435_v18, %v3624_v61 }
 0x17d   : > { %v2497_v20 = vadd.f32 %v2481_v13, %v2352_v48  ;;  %v2289_v17 = vadd.f32 %v2273_v60, %v2144_v23  ;;  %v4491_v59 = vsel %vm917_vm3, %v2408_v39, 0.0  ;;  %v2621_v26 = vmax.f32 %v2605_v46, 0.0  ;;  %v4532_v48 = vld [vmem:[#allocation2 + $0xd0] sm:$0xff] }
 0x17e   : > { %v2606_v56 = vadd.f32 %v4411_v5, %v2583_v12  ;;  %v4498_v40 = vsel %vm990_vm4, %v2432_v15, %v2440_v22  ;;  %v2065_v34 = vmul.f32 %v4345_v14, %v3560_v57  ;;  %v2097_v54 = vmul.f32 %v4320_v30, %v3571_v63 }
 0x17f   : > { %v2529_v21 = vadd.f32 %v2513_v24, %v2497_v20  ;;  %v2321_v37 = vadd.f32 %v2305_v19, %v2289_v17  ;;  %v2637_v25 = vmin.f32 %v2621_v26, 6.0  ;;  %v2482_v33 = vmul.f32 %v4491_v59, %v3627_v62 }
 0x180   : > { %v2622_v11 = vmax.f32 %v2606_v56, 0.0  ;;  %v2129_v38 = vmul.f32 %v4392_v3, %v3589_v16  ;;  %v2113_v13 = vadd.f32 %v2097_v54, %v2065_v34  ;;  %v2274_v9 = vmul.f32 %v4445_v28, %v3610_v45 }
 0x181   : > { %v2561_v32 = vadd.f32 %v2545_v8, %v2529_v21  ;;  %v2353_v4 = vadd.f32 %v2337_v52, %v2321_v37  ;;  %3298 = vmatmul.mubr.msk.f32.vlgmr.msra.gmra.mxu1 %vm858_vm1, %v2637_v25  ;;  %v2514_v30 = vmul.f32 %v4461_v41, %v3630_v0  ;;  %v4515_v35 = vsel %vm935_vm2, %v2384_v36, %v2392_v31  ;;  %v4534_v8 = vld [vmem:[#allocation2 + $0xd8] sm:$0xff] }
 0x182   : > { %v2638_v14 = vmin.f32 %v2622_v11, 6.0  ;;  %v2145_v3 = vadd.f32 %v2129_v38, %v2113_v13  ;;  %v2456_v24 = vsel %vm990_vm4, %v2440_v22, %v2432_v15  ;;  %v2546_v27 = vmul.f32 %v4314_v44, %v4498_v40 }
 0x183   : > { %v2584_v51 = vmul.f32 %v4401_v7, %v2561_v32  ;;  %v2498_v55 = vadd.f32 %v2482_v33, %v2353_v4  ;;  %v2306_v2 = vmul.f32 %v4382_v50, %v3613_v47  ;;  %v2338_v29 = vmul.f32 %v4468_v53, %v3624_v61 }
 0x184   : > { %3300 = vmatprep.mubr.msk.f32.mxu1 %vm858_vm1, %v2638_v14  ;;  %v2066_v60 = vmul.f32 %v4421_v42, %v3560_v57  ;;  %v2290_v36 = vadd.f32 %v2274_v9, %v2145_v3  ;;  %v2098_v31 = vmul.f32 %v4380_v1, %v3571_v63  ;;  %v4538_v23 = vsel %vm973_vm5, %v2456_v24, 0.0 }
 0x185   : > { %v2607_v10 = vadd.f32 %v4411_v5, %v2584_v51  ;;  %v2530_v6 = vadd.f32 %v2514_v30, %v2498_v55  ;;  %v2483_v15 = vmul.f32 %v4515_v35, %v3627_v62  ;;  %v2130_v42 = vmul.f32 %v4435_v18, %v3589_v16 }
 0x186   : > { %v2275_v46 = vmul.f32 %v4491_v59, %v3610_v45  ;;  %v2322_v1 = vadd.f32 %v2306_v2, %v2290_v36  ;;  %v2114_v22 = vadd.f32 %v2098_v31, %v2066_v60  ;;  %v2515_v20 = vmul.f32 %v4463_v49, %v3630_v0 }
 0x187   : > { %v2623_v12 = vmax.f32 %v2607_v10, 0.0  ;;  %v2562_v39 = vadd.f32 %v2546_v27, %v2530_v6  ;;  %v2385_v17 = vrot.slane %v4532_v48, 7  ;;  %v2393_v19 = vrot.slane %v4534_v8, 7 }
 0x188   : > { %v2433_v26 = vrot.slane %v4532_v48, 1  ;;  %v2354_v18 = vadd.f32 %v2338_v29, %v2322_v1  ;;  %v2146_v21 = vadd.f32 %v2130_v42, %v2114_v22  ;;  %v2307_v37 = vmul.f32 %v4461_v41, %v3613_v47  ;;  %v4601_v1 = vld [vmem:[#allocation2 + $0xe8] sm:$0xff] }
 0x189   : > { %v2639_v56 = vmin.f32 %v2623_v12, 6.0  ;;  %v2585_v52 = vmul.f32 %v4401_v7, %v2562_v39  ;;  %v2409_v34 = vsel %vm935_vm2, %v2393_v19, %v2385_v17  ;;  %v2441_v54 = vrot.slane %v4534_v8, 1  ;;  %v4599_v39 = vld [vmem:[#allocation2 + $0xe0] sm:$0xff] }
 0x18a   : > { %v2067_v25 = vmul.f32 %v4445_v28, %v3560_v57  ;;  %v2499_v33 = vadd.f32 %v2483_v15, %v2354_v18  ;;  %v2291_v38 = vadd.f32 %v2275_v46, %v2146_v21  ;;  %v4563_v32 = vsel %vm917_vm3, %v2409_v34, 0.0 }
 0x18b   : > { %3301 = vmatmul.mubr.msk.f32.gmra.mxu1 %vm858_vm1, %v2639_v56  ;;  %v2608_v11 = vadd.f32 %v4411_v5, %v2585_v52  ;;  %v2547_v4 = vmul.f32 %v4314_v44, %v4538_v23  ;;  %v2339_v13 = vmul.f32 %v4498_v40, %v3624_v61  ;;  %v2099_v9 = vmul.f32 %v4382_v50, %v3571_v63 }
 0x18c   : > { %v2131_v28 = vmul.f32 %v4468_v53, %v3589_v16  ;;  %v2531_v30 = vadd.f32 %v2515_v20, %v2499_v33  ;;  %v2323_v51 = vadd.f32 %v2307_v37, %v2291_v38  ;;  %v4575_v55 = vsel %vm990_vm4, %v2433_v26, %v2441_v54 }
 0x18d   : > { %v2624_v14 = vmax.f32 %v2608_v11, 0.0  ;;  %v2484_v3 = vmul.f32 %v4563_v32, %v3627_v62  ;;  %v2115_v24 = vadd.f32 %v2099_v9, %v2067_v25  ;;  %v2276_v27 = vmul.f32 %v4515_v35, %v3610_v45 }
 0x18e   : > { %v4583_v50 = vsel %vm935_vm2, %v2385_v17, %v2393_v19  ;;  %v2563_v53 = vadd.f32 %v2547_v4, %v2531_v30  ;;  %v2355_v29 = vadd.f32 %v2339_v13, %v2323_v51  ;;  %v2457_v60 = vsel %vm990_vm4, %v2441_v54, %v2433_v26 }
 0x18f   : > { %v2640_v2 = vmin.f32 %v2624_v14, 6.0  ;;  %v2516_v10 = vmul.f32 %v4532_v48, %v3630_v0  ;;  %v2548_v6 = vmul.f32 %v4314_v44, %v4575_v55  ;;  %v2147_v36 = vadd.f32 %v2131_v28, %v2115_v24 }
 0x190   : > { %v2308_v31 = vmul.f32 %v4463_v49, %v3613_v47  ;;  %v2586_v15 = vmul.f32 %v4401_v7, %v2563_v53  ;;  %v2500_v42 = vadd.f32 %v2484_v3, %v2355_v29  ;;  %v2340_v46 = vmul.f32 %v4538_v23, %v3624_v61 }
 0x191   : > { %3303 = vmatprep.mubr.msk.f32.mxu1 %vm858_vm1, %v2640_v2  ;;  %v2068_v12 = vmul.f32 %v4491_v59, %v3560_v57  ;;  %v2292_v22 = vadd.f32 %v2276_v27, %v2147_v36  ;;  %v4605_v20 = vsel %vm973_vm5, %v2457_v60, 0.0  ;;  %v2485_v17 = vmul.f32 %v4583_v50, %v3627_v62 }
 0x192   : > { %v2100_v19 = vmul.f32 %v4461_v41, %v3571_v63  ;;  %v2609_v26 = vadd.f32 %v4411_v5, %v2586_v15  ;;  %v2532_v56 = vadd.f32 %v2516_v10, %v2500_v42  ;;  %v2132_v59 = vmul.f32 %v4498_v40, %v3589_v16 }
 0x193   : > { %v2277_v52 = vmul.f32 %v4563_v32, %v3610_v45  ;;  %v2324_v18 = vadd.f32 %v2308_v31, %v2292_v22  ;;  %v2386_v37 = vrot.slane %v4599_v39, 7  ;;  %v2394_v34 = vrot.slane %v4601_v1, 7 }
 0x194   : > { %v2116_v21 = vadd.f32 %v2100_v19, %v2068_v12  ;;  %v2625_v54 = vmax.f32 %v2609_v26, 0.0  ;;  %v2564_v25 = vadd.f32 %v2548_v6, %v2532_v56  ;;  %v2517_v41 = vmul.f32 %v4534_v8, %v3630_v0 }
 0x195   : > { %v2549_v11 = vmul.f32 %v4314_v44, %v4605_v20  ;;  %v2356_v33 = vadd.f32 %v2340_v46, %v2324_v18  ;;  %v2410_v40 = vsel %vm935_vm2, %v2394_v34, %v2386_v37  ;;  %v2434_v4 = vrot.slane %v4599_v39, 1 }
 0x196   : > { %v2148_v38 = vadd.f32 %v2132_v59, %v2116_v21  ;;  %v2641_v13 = vmin.f32 %v2625_v54, 6.0  ;;  %v2587_v9 = vmul.f32 %v4401_v7, %v2564_v25  ;;  %v2309_v28 = vmul.f32 %v4532_v48, %v3613_v47  ;;  %v4668_v21 = vld [vmem:[#allocation2 + $0xf0] sm:$0xff] }
 0x197   : > { %v2341_v14 = vmul.f32 %v4575_v55, %v3624_v61  ;;  %v2501_v30 = vadd.f32 %v2485_v17, %v2356_v33  ;;  %v4632_v3 = vsel %vm917_vm3, %v2410_v40, 0.0  ;;  %v2442_v24 = vrot.slane %v4601_v1, 1 }
 0x198   : > { %v2293_v51 = vadd.f32 %v2277_v52, %v2148_v38  ;;  %3304 = vmatmul.mubr.msk.f32.gmra.mxu1 %vm858_vm1, %v2641_v13  ;;  %v2610_v27 = vadd.f32 %v4411_v5, %v2587_v9  ;;  %v2069_v2 = vmul.f32 %v4515_v35, %v3560_v57  ;;  %v2101_v53 = vmul.f32 %v4463_v49, %v3571_v63 }
 0x199   : > { %v2133_v29 = vmul.f32 %v4538_v23, %v3589_v16  ;;  %v2533_v60 = vadd.f32 %v2517_v41, %v2501_v30  ;;  %v4645_v6 = vsel %vm990_vm4, %v2434_v4, %v2442_v24  ;;  %v2518_v36 = vmul.f32 %v4599_v39, %v3630_v0 }
 0x19a   : > { %v2325_v10 = vadd.f32 %v2309_v28, %v2293_v51  ;;  %v2626_v31 = vmax.f32 %v2610_v27, 0.0  ;;  %v2486_v15 = vmul.f32 %v4632_v3, %v3627_v62  ;;  %v2117_v35 = vadd.f32 %v2101_v53, %v2069_v2 }
 0x19b   : > { %v2278_v49 = vmul.f32 %v4583_v50, %v3610_v45  ;;  %v2565_v42 = vadd.f32 %v2549_v11, %v2533_v60  ;;  %v4655_v23 = vsel %vm935_vm2, %v2386_v37, %v2394_v34  ;;  %v2458_v12 = vsel %vm990_vm4, %v2442_v24, %v2434_v4  ;;  %v4670_v37 = vld [vmem:[#allocation2 + $0xf8] sm:$0xff] }
 0x19c   : > { %v2357_v46 = vadd.f32 %v2341_v14, %v2325_v10  ;;  %v2642_v22 = vmin.f32 %v2626_v31, 6.0  ;;  %v2550_v17 = vmul.f32 %v4314_v44, %v4645_v6  ;;  %v2149_v19 = vadd.f32 %v2133_v29, %v2117_v35 }
 0x19d   : > { %v2310_v26 = vmul.f32 %v4534_v8, %v3613_v47  ;;  %v2588_v56 = vmul.f32 %v4401_v7, %v2565_v42  ;;  %v2342_v52 = vmul.f32 %v4605_v20, %v3624_v61  ;;  %v2070_v18 = vmul.f32 %v4563_v32, %v3560_v57 }
 0x19e   : > { %v2502_v59 = vadd.f32 %v2486_v15, %v2357_v46  ;;  %3306 = vmatprep.mubr.msk.f32.mxu1 %vm858_vm1, %v2642_v22  ;;  %v2294_v34 = vadd.f32 %v2278_v49, %v2149_v19  ;;  %v4675_v54 = vsel %vm973_vm5, %v2458_v12, 0.0  ;;  %v2487_v25 = vmul.f32 %v4655_v23, %v3627_v62 }
 0x19f   : > { %v2102_v41 = vmul.f32 %v4532_v48, %v3571_v63  ;;  %v2611_v11 = vadd.f32 %v4411_v5, %v2588_v56  ;;  %v2134_v33 = vmul.f32 %v4575_v55, %v3589_v16  ;;  %v2279_v38 = vmul.f32 %v4632_v3, %v3610_v45 }
 0x1a0   : > { %v2534_v32 = vadd.f32 %v2518_v36, %v2502_v59  ;;  %v2326_v40 = vadd.f32 %v2310_v26, %v2294_v34  ;;  %v2387_v13 = vrot.slane %v4668_v21, 7  ;;  %v2395_v9 = vrot.slane %v4670_v37, 7 }
 0x1a1   : > { %v2118_v4 = vadd.f32 %v2102_v41, %v2070_v18  ;;  %v2627_v28 = vmax.f32 %v2611_v11, 0.0  ;;  %v2519_v48 = vmul.f32 %v4601_v1, %v3630_v0  ;;  %v2551_v30 = vmul.f32 %v4314_v44, %v4675_v54 }
 0x1a2   : > { %v2566_v14 = vadd.f32 %v2550_v17, %v2534_v32  ;;  %v2358_v51 = vadd.f32 %v2342_v52, %v2326_v40  ;;  %v2411_v55 = vsel %vm935_vm2, %v2395_v9, %v2387_v13  ;;  %v2435_v27 = vrot.slane %v4668_v21, 1 }
 0x1a3   : > { %v2150_v24 = vadd.f32 %v2134_v33, %v2118_v4  ;;  %v2643_v2 = vmin.f32 %v2627_v28, 6.0  ;;  %v2311_v29 = vmul.f32 %v4599_v39, %v3613_v47  ;;  %v2343_v60 = vmul.f32 %v4645_v6, %v3624_v61  ;;  %v4738_v4 = vld [vmem:[#allocation2 + $0x100] sm:$0xff] }
 0x1a4   : > { %v2589_v53 = vmul.f32 %v4401_v7, %v2566_v14  ;;  %v2503_v10 = vadd.f32 %v2487_v25, %v2358_v51  ;;  %v4702_v31 = vsel %vm917_vm3, %v2411_v55, 0.0  ;;  %v2443_v15 = vrot.slane %v4670_v37, 1 }
 0x1a5   : > { %v2295_v36 = vadd.f32 %v2279_v38, %v2150_v24  ;;  %3307 = vmatmul.mubr.msk.f32.gmra.mxu1 %vm858_vm1, %v2643_v2  ;;  %v2071_v49 = vmul.f32 %v4583_v50, %v3560_v57  ;;  %v2103_v42 = vmul.f32 %v4534_v8, %v3571_v63  ;;  %v2135_v46 = vmul.f32 %v4605_v20, %v3589_v16 }
 0x1a6   : > { %v2612_v35 = vadd.f32 %v4411_v5, %v2589_v53  ;;  %v2535_v12 = vadd.f32 %v2519_v48, %v2503_v10  ;;  %v4715_v17 = vsel %vm990_vm4, %v2435_v27, %v2443_v15  ;;  %v2520_v19 = vmul.f32 %v4668_v21, %v3630_v0 }
 0x1a7   : > { %v2327_v22 = vadd.f32 %v2311_v29, %v2295_v36  ;;  %v2488_v56 = vmul.f32 %v4702_v31, %v3627_v62  ;;  %v2119_v50 = vadd.f32 %v2103_v42, %v2071_v49  ;;  %v2280_v8 = vmul.f32 %v4655_v23, %v3610_v45 }
 0x1a8   : > { %v2628_v26 = vmax.f32 %v2612_v35, 0.0  ;;  %v2567_v59 = vadd.f32 %v2551_v30, %v2535_v12  ;;  %v4725_v20 = vsel %vm935_vm2, %v2387_v13, %v2395_v9  ;;  %v2459_v18 = vsel %vm990_vm4, %v2443_v15, %v2435_v27  ;;  %v4740_v13 = vld [vmem:[#allocation2 + $0x108] sm:$0xff] }
 0x1a9   : > { %v2359_v52 = vadd.f32 %v2343_v60, %v2327_v22  ;;  %v2552_v25 = vmul.f32 %v4314_v44, %v4715_v17  ;;  %v2151_v41 = vadd.f32 %v2135_v46, %v2119_v50  ;;  %v2312_v11 = vmul.f32 %v4601_v1, %v3613_v47 }
 0x1aa   : > { %v2644_v34 = vmin.f32 %v2628_v26, 6.0  ;;  %v2590_v32 = vmul.f32 %v4401_v7, %v2567_v59  ;;  %v2344_v38 = vmul.f32 %v4675_v54, %v3624_v61  ;;  %v2072_v40 = vmul.f32 %v4632_v3, %v3560_v57 }
 0x1ab   : > { %v2504_v33 = vadd.f32 %v2488_v56, %v2359_v52  ;;  %v2296_v9 = vadd.f32 %v2280_v8, %v2151_v41  ;;  %v4745_v28 = vsel %vm973_vm5, %v2459_v18, 0.0  ;;  %v2489_v14 = vmul.f32 %v4725_v20, %v3627_v62 }
 0x1ac   : > { %3309 = vmatprep.mubr.msk.f32.mxu1 %vm858_vm1, %v2644_v34  ;;  %v2104_v48 = vmul.f32 %v4599_v39, %v3571_v63  ;;  %v2613_v30 = vadd.f32 %v4411_v5, %v2590_v32  ;;  %v2136_v51 = vmul.f32 %v4645_v6, %v3589_v16  ;;  %v2281_v24 = vmul.f32 %v4702_v31, %v3610_v45 }
 0x1ad   : > { %v2536_v3 = vadd.f32 %v2520_v19, %v2504_v33  ;;  %v2328_v55 = vadd.f32 %v2312_v11, %v2296_v9  ;;  %v2388_v2 = vrot.slane %v4738_v4, 7  ;;  %v2396_v53 = vrot.slane %v4740_v13, 7 }
 0x1ae   : > { %v2120_v27 = vadd.f32 %v2104_v48, %v2072_v40  ;;  %v2629_v29 = vmax.f32 %v2613_v30, 0.0  ;;  %v2521_v39 = vmul.f32 %v4670_v37, %v3630_v0  ;;  %v2553_v10 = vmul.f32 %v4314_v44, %v4745_v28 }
 0x1af   : > { %v2568_v60 = vadd.f32 %v2552_v25, %v2536_v3  ;;  %v2360_v36 = vadd.f32 %v2344_v38, %v2328_v55  ;;  %v2412_v6 = vsel %vm935_vm2, %v2396_v53, %v2388_v2  ;;  %v2436_v35 = vrot.slane %v4738_v4, 1 }
 0x1b0   : > { %v2152_v15 = vadd.f32 %v2136_v51, %v2120_v27  ;;  %v2645_v49 = vmin.f32 %v2629_v29, 6.0  ;;  %v2313_v46 = vmul.f32 %v4668_v21, %v3613_v47  ;;  %v2345_v12 = vmul.f32 %v4715_v17, %v3624_v61  ;;  %v2380_v27 = vld [vmem:[#allocation2 + $0x110] sm:$0xff] }
 0x1b1   : > { %v2591_v42 = vmul.f32 %v4401_v7, %v2568_v60  ;;  %v2505_v22 = vadd.f32 %v2489_v14, %v2360_v36  ;;  %v2426_v26 = vsel %vm917_vm3, %v2412_v6, 0.0  ;;  %v2444_v56 = vrot.slane %v4740_v13, 1 }
 0x1b2   : > { %v2297_v19 = vadd.f32 %v2281_v24, %v2152_v15  ;;  %3310 = vmatmul.mubr.msk.f32.gmra.mxu1 %vm858_vm1, %v2645_v49  ;;  %v2073_v8 = vmul.f32 %v4655_v23, %v3560_v57  ;;  %v2105_v59 = vmul.f32 %v4601_v1, %v3571_v63  ;;  %v2137_v52 = vmul.f32 %v4675_v54, %v3589_v16 }
 0x1b3   : > { %v2614_v50 = vadd.f32 %v4411_v5, %v2591_v42  ;;  %v2537_v18 = vadd.f32 %v2521_v39, %v2505_v22  ;;  %v2452_v25 = vsel %vm990_vm4, %v2436_v35, %v2444_v56  ;;  %v2522_v41 = vmul.f32 %v4738_v4, %v3630_v0 }
 0x1b4   : > { %v2329_v34 = vadd.f32 %v2313_v46, %v2297_v19  ;;  %v2490_v32 = vmul.f32 %v2426_v26, %v3627_v62  ;;  %v2121_v33 = vadd.f32 %v2105_v59, %v2073_v8  ;;  %v2282_v23 = vmul.f32 %v4725_v20, %v3610_v45 }
 0x1b5   : > { %v2630_v11 = vmax.f32 %v2614_v50, 0.0  ;;  %v2569_v38 = vadd.f32 %v2553_v10, %v2537_v18  ;;  %v2404_v54 = vsel %vm935_vm2, %v2388_v2, %v2396_v53  ;;  %v2460_v40 = vsel %vm990_vm4, %v2444_v56, %v2436_v35  ;;  %v4800_v2 = vld [vmem:[#allocation2 + $0x118] sm:$0xff] }
 0x1b6   : > { %v2361_v1 = vadd.f32 %v2345_v12, %v2329_v34  ;;  %v2554_v14 = vmul.f32 %v4314_v44, %v2452_v25  ;;  %v2153_v48 = vadd.f32 %v2137_v52, %v2121_v33  ;;  %v2314_v30 = vmul.f32 %v4670_v37, %v3613_v47 }
 0x1b7   : > { %v2646_v9 = vmin.f32 %v2630_v11, 6.0  ;;  %v2592_v3 = vmul.f32 %v4401_v7, %v2569_v38  ;;  %v2346_v24 = vmul.f32 %v4745_v28, %v3624_v61  ;;  %v2074_v55 = vmul.f32 %v4702_v31, %v3560_v57 }
 0x1b8   : > { %v2506_v51 = vadd.f32 %v2490_v32, %v2361_v1  ;;  %v2298_v53 = vadd.f32 %v2282_v23, %v2153_v48  ;;  %v2475_v29 = vsel %vm973_vm5, %v2460_v40, 0.0  ;;  %v2491_v60 = vmul.f32 %v2404_v54, %v3627_v62 }
 0x1b9   : > { %3312 = vmatprep.mubr.msk.f32.mxu1 %vm858_vm1, %v2646_v9  ;;  %v2106_v39 = vmul.f32 %v4668_v21, %v3571_v63  ;;  %v2615_v10 = vadd.f32 %v4411_v5, %v2592_v3  ;;  %v2138_v31 = vmul.f32 %v4715_v17, %v3589_v16  ;;  %v2283_v15 = vmul.f32 %v2426_v26, %v3610_v45 }
 0x1ba   : > { %v2538_v36 = vadd.f32 %v2522_v41, %v2506_v51  ;;  %v2330_v6 = vadd.f32 %v2314_v30, %v2298_v53  ;;  %v2389_v49 = vrot.slane %v2380_v27, 7  ;;  %v2397_v42 = vrot.slane %v4800_v2, 7  ;;  %v4855_v53 = vld [vmem:[%s5051_s9] ss:$0 sm:$0xff] }
 0x1bb   : > { %v2122_v35 = vadd.f32 %v2106_v39, %v2074_v55  ;;  %v2631_v46 = vmax.f32 %v2615_v10, 0.0  ;;  %v2523_v22 = vmul.f32 %v4740_v13, %v3630_v0  ;;  %v2555_v21 = vmul.f32 %v4314_v44, %v2475_v29 }
 0x1bc   : > { %v2570_v12 = vadd.f32 %v2554_v14, %v2538_v36  ;;  %v2362_v19 = vadd.f32 %v2346_v24, %v2330_v6  ;;  %v2315_v50 = vmul.f32 %v4738_v4, %v3613_v47  ;;  %v2413_v17 = vsel %vm935_vm2, %v2397_v42, %v2389_v49 }
 0x1bd   : > { %v2154_v56 = vadd.f32 %v2138_v31, %v2122_v35  ;;  %v2647_v26 = vmin.f32 %v2631_v46, 6.0  ;;  %v2347_v59 = vmul.f32 %v2452_v25, %v3624_v61  ;;  %v2428_v52 = vsel %vm917_vm3, %v2413_v17, 0.0 }
 0x1be   : > { %v2593_v8 = vmul.f32 %v4401_v7, %v2570_v12  ;;  %v2507_v18 = vadd.f32 %v2491_v60, %v2362_v19  ;;  %v2437_v41 = vrot.slane %v2380_v27, 1  ;;  %v2445_v11 = vrot.slane %v4800_v2, 1 }
 0x1bf   : > { %v2299_v34 = vadd.f32 %v2283_v15, %v2154_v56  ;;  %3313 = vmatmul.mubr.msk.f32.gmra.mxu1 %vm858_vm1, %v2647_v26  ;;  %v2075_v32 = vmul.f32 %v4725_v20, %v3560_v57  ;;  %v2107_v33 = vmul.f32 %v4670_v37, %v3571_v63  ;;  %v2139_v25 = vmul.f32 %v4745_v28, %v3589_v16  ;;  %v4842_v16 = vld [vmem:[%s5050_s8] ss:$0 sm:$0xff] }
 0x1c0   : > { %v2616_v4 = vadd.f32 %v4411_v5, %v2593_v8  ;;  %v2539_v23 = vadd.f32 %v2523_v22, %v2507_v18  ;;  %v2453_v1 = vsel %vm990_vm4, %v2437_v41, %v2445_v11  ;;  %v2492_v40 = vmul.f32 %v2428_v52, %v3627_v62 }
 0x1c1   : > { %v2331_v38 = vadd.f32 %v2315_v50, %v2299_v34  ;;  %v2123_v14 = vadd.f32 %v2107_v33, %v2075_v32  ;;  %v2284_v48 = vmul.f32 %v2404_v54, %v3610_v45  ;;  %v2524_v57 = vmul.f32 %v2380_v27, %v3630_v0  ;;  %v1901_v32 = vld [vmem:[%s3428_s20 + $0x10] sm:$0xff] }
 0x1c2   : > { %v2632_v9 = vmax.f32 %v2616_v4, 0.0  ;;  %v2571_v30 = vadd.f32 %v2555_v21, %v2539_v23  ;;  %v2556_v63 = vmul.f32 %v4314_v44, %v2453_v1  ;;  %v2405_v45 = vsel %vm935_vm2, %v2389_v49, %v2397_v42  ;;  %v1904_v1 = vld [vmem:[%s3428_s20 + $0x28] sm:$0xff] }
 0x1c3   : > { %v2363_v3 = vadd.f32 %v2347_v59, %v2331_v38  ;;  %v2155_v37 = vadd.f32 %v2139_v25, %v2123_v14  ;;  %v2461_v54 = vsel %vm990_vm4, %v2445_v11, %v2437_v41  ;;  %v2316_v55 = vmul.f32 %v4740_v13, %v3613_v47  ;;  %v1900_v13 = vld [vmem:[%s3428_s20 + $0x8] sm:$0xff]  ;;  %v1902_v41 = vld [vmem:[%s3428_s20 + $0x18] sm:$0xff] }
 0x1c4   : > { %v2648_v20 = vmin.f32 %v2632_v9, 6.0  ;;  %v2594_v28 = vmul.f32 %v4401_v7, %v2571_v30  ;;  %v2348_v36 = vmul.f32 %v2475_v29, %v3624_v61  ;;  %v2477_v31 = vsel %vm973_vm5, %v2461_v54, 0.0  ;;  %v1905_v54 = vld [vmem:[%s3428_s20 + $0x30] sm:$0xff] }
 0x1c5   : > { %v2508_v51 = vadd.f32 %v2492_v40, %v2363_v3  ;;  %v2300_v24 = vadd.f32 %v2284_v48, %v2155_v37  ;;  %v2493_v47 = vmul.f32 %v2405_v45, %v3627_v62  ;;  %v2525_v12 = vmul.f32 %v4800_v2, %v3630_v0  ;;  %v1903_v48 = vld [vmem:[%s3428_s20 + $0x20] sm:$0xff]  ;;  %v1906_v37 = vld [vmem:[%s3428_s20 + $0x38] sm:$0xff] }
 0x1c6   : > { %3315 = vmatprep.mubr.msk.f32.mxu1 %vm858_vm1, %v2648_v20  ;;  %v3263_v27 = vpop.f32.mrf.mxu0  ;;  %v2617_v60 = vadd.f32 %v4411_v5, %v2594_v28  ;;  %v2557_v19 = vmul.f32 %v4314_v44, %v2477_v31 }
 0x1c7   : > { %v2540_v39 = vadd.f32 %v2524_v57, %v2508_v51  ;;  %v1861_v43 = vmul.f32 %v3263_v27, %v4842_v16  ;;  %v2332_v10 = vadd.f32 %v2316_v55, %v2300_v24 }
 0x1c8   : > { %v1774_v15 = vpop.f32.mrf.mxu0  ;;  %v2633_v6 = vmax.f32 %v2617_v60, 0.0 }
 0x1c9   : > { %v2572_v35 = vadd.f32 %v2556_v63, %v2540_v39  ;;  %v1884_v49 = vadd.f32 %v4855_v53, %v1861_v43  ;;  %v1860_v42 = vmul.f32 %v4842_v16, %v1774_v15  ;;  %v2364_v46 = vadd.f32 %v2348_v36, %v2332_v10  ;;  %v1908_v43 = vld [vmem:[%s3428_s20 + $0x48] sm:$0xff] }
 0x1ca   : > { %v2649_v61 = vmin.f32 %v2633_v6, 6.0 }
 0x1cb   : > { %v2595_v62 = vmul.f32 %v4401_v7, %v2572_v35  ;;  %v1916_v29 = vadd.f32 %v1900_v13, %v1884_v49  ;;  %v1883_v22 = vadd.f32 %v4855_v53, %v1860_v42  ;;  %v2509_v21 = vadd.f32 %v2493_v47, %v2364_v46  ;;  %v1907_v47 = vld [vmem:[%s3428_s20 + $0x40] sm:$0xff]  ;;  %v1910_v42 = vld [vmem:[%s3428_s20 + $0x58] sm:$0xff] }
 0x1cc   : > { %3316 = vmatmul.mubr.msk.f32.gmra.mxu1 %vm858_vm1, %v2649_v61  ;;  %v1909_v61 = vld [vmem:[%s3428_s20 + $0x50] sm:$0xff] }
 0x1cd   : > { %v2618_v0 = vadd.f32 %v4411_v5, %v2595_v62  ;;  %1932 = vst.msk [vmem:[%s4873_s18 + $0x8] sm:$0xff] %vm393_vm0, %v1916_v29  ;;  %v1915_v2 = vadd.f32 %v1899_v58, %v1883_v22  ;;  %v2541_v56 = vadd.f32 %v2525_v12, %v2509_v21 }
 0x1cf   : > { %v2634_v50 = vmax.f32 %v2618_v0, 0.0  ;;  %1931 = vst.msk [vmem:[%s4873_s18] sm:$0xff] %vm393_vm0, %v1915_v2  ;;  %v2573_v17 = vadd.f32 %v2557_v19, %v2541_v56  ;;  %v1912_v0 = vld [vmem:[%s3428_s20 + $0x68] sm:$0xff] }
 0x1d1   : > { %v2650_v26 = vmin.f32 %v2634_v50, 6.0  ;;  %v2596_v8 = vmul.f32 %v4401_v7, %v2573_v17  ;;  %v1911_v17 = vld [vmem:[%s3428_s20 + $0x60] sm:$0xff] }
 0x1d3   : > { %3318 = vmatprep.mubr.msk.f32.mxu1 %vm858_vm1, %v2650_v26  ;;  %v2619_v44 = vadd.f32 %v4411_v5, %v2596_v8 }
 0x1d5   : > { %v2635_v59 = vmax.f32 %v2619_v44, 0.0 }
 0x1d7   : > { %v2651_v52 = vmin.f32 %v2635_v59, 6.0 }
 0x1d9   : > { %3319 = vmatmul.mubr.msk.f32.gmra.mxu1 %vm858_vm1, %v2651_v52 }
 0x1e0   : > { %v3266_v18 = vpop.f32.mrf.mxu1 }
 0x1e1   : > { %v1863_v34 = vmul.f32 %v3266_v18, %v4842_v16  ;;  %v1914_v18 = vld [vmem:[%s3428_s20 + $0x78] sm:$0xff] }
 0x1e2   : > { %v1784_v11 = vpop.f32.mrf.mxu1 }
 0x1e3   : > { %v1886_v4 = vadd.f32 %v4855_v53, %v1863_v34  ;;  %v1862_v7 = vmul.f32 %v4842_v16, %v1784_v11 }
 0x1e5   : > { %v1918_v33 = vadd.f32 %v1902_v41, %v1886_v4  ;;  %v1885_v5 = vadd.f32 %v4855_v53, %v1862_v7  ;;  %v1913_v4 = vld [vmem:[%s3428_s20 + $0x70] sm:$0xff] }
 0x1e7   : > { %1934 = vst.msk [vmem:[%s4873_s18 + $0x18] sm:$0xff] %vm393_vm0, %v1918_v33  ;;  %v1917_v25 = vadd.f32 %v1901_v32, %v1885_v5 }
 0x1e9   : > { %1933 = vst.msk [vmem:[%s4873_s18 + $0x10] sm:$0xff] %vm393_vm0, %v1917_v25 }
 0x1ed   : > { %v3269_v23 = vpop.f32.mrf.mxu1 }
 0x1ee   : > { %v1865_v38 = vmul.f32 %v3269_v23, %v4842_v16  ;;  %v3087_v23 = vld [vmem:[%s3428_s20 + $0x88] sm:$0xff] }
 0x1ef   : > { %v1794_v40 = vpop.f32.mrf.mxu1 }
 0x1f0   : > { %v1888_v9 = vadd.f32 %v4855_v53, %v1865_v38  ;;  %v1864_v14 = vmul.f32 %v4842_v16, %v1794_v40 }
 0x1f2   : > { %v1920_v30 = vadd.f32 %v1904_v1, %v1888_v9  ;;  %v1887_v3 = vadd.f32 %v4855_v53, %v1864_v14  ;;  %v3086_v9 = vld [vmem:[%s3428_s20 + $0x80] sm:$0xff] }
 0x1f4   : > { %1936 = vst.msk [vmem:[%s4873_s18 + $0x28] sm:$0xff] %vm393_vm0, %v1920_v30  ;;  %v1919_v57 = vadd.f32 %v1903_v48, %v1887_v3 }
 0x1f6   : > { %1935 = vst.msk [vmem:[%s4873_s18 + $0x20] sm:$0xff] %vm393_vm0, %v1919_v57 }
 0x1fc   : > { %v3272_v20 = vpop.f32.mrf.mxu1 }
 0x1fd   : > { %v1867_v63 = vmul.f32 %v3272_v20, %v4842_v16  ;;  %v3089_v20 = vld [vmem:[%s3428_s20 + $0x98] sm:$0xff] }
 0x1fe   : > { %v1804_v28 = vpop.f32.mrf.mxu1 }
 0x1ff   : > { %v1890_v51 = vadd.f32 %v4855_v53, %v1867_v63  ;;  %v1866_v45 = vmul.f32 %v4842_v16, %v1804_v28 }
 0x201   : > { %v1922_v24 = vadd.f32 %v1906_v37, %v1890_v51  ;;  %v1889_v55 = vadd.f32 %v4855_v53, %v1866_v45  ;;  %v3088_v51 = vld [vmem:[%s3428_s20 + $0x90] sm:$0xff] }
 0x203   : > { %1938 = vst.msk [vmem:[%s4873_s18 + $0x38] sm:$0xff] %vm393_vm0, %v1922_v24  ;;  %v1921_v27 = vadd.f32 %v1905_v54, %v1889_v55 }
 0x205   : > { %1937 = vst.msk [vmem:[%s4873_s18 + $0x30] sm:$0xff] %vm393_vm0, %v1921_v27 }
 0x20b   : > { %v3275_v60 = vpop.f32.mrf.mxu1 }
 0x20c   : > { %v1869_v39 = vmul.f32 %v3275_v60, %v4842_v16  ;;  %v3091_v60 = vld [vmem:[%s3428_s20 + $0xa8] sm:$0xff] }
 0x20d   : > { %v1814_v10 = vpop.f32.mrf.mxu1 }
 0x20e   : > { %v1892_v36 = vadd.f32 %v4855_v53, %v1869_v39  ;;  %v1868_v31 = vmul.f32 %v4842_v16, %v1814_v10 }
 0x210   : > { %v1924_v13 = vadd.f32 %v1908_v43, %v1892_v36  ;;  %v1891_v15 = vadd.f32 %v4855_v53, %v1868_v31  ;;  %v3090_v36 = vld [vmem:[%s3428_s20 + $0xa0] sm:$0xff] }
 0x212   : > { %1940 = vst.msk [vmem:[%s4873_s18 + $0x48] sm:$0xff] %vm393_vm0, %v1924_v13  ;;  %v1923_v6 = vadd.f32 %v1907_v47, %v1891_v15 }
 0x214   : > { %1939 = vst.msk [vmem:[%s4873_s18 + $0x40] sm:$0xff] %vm393_vm0, %v1923_v6 }
 0x216   : > { %v3278_v35 = vpop.f32.mrf.mxu1 }
 0x217   : > { %v1871_v49 = vmul.f32 %v3278_v35, %v4842_v16  ;;  %v3093_v35 = vld [vmem:[%s3428_s20 + $0xb8] sm:$0xff] }
 0x218   : > { %v1824_v46 = vpop.f32.mrf.mxu1 }
 0x219   : > { %v1894_v12 = vadd.f32 %v4855_v53, %v1871_v49  ;;  %v1870_v58 = vmul.f32 %v4842_v16, %v1824_v46 }
 0x21b   : > { %v1926_v62 = vadd.f32 %v1910_v42, %v1894_v12  ;;  %v1893_v29 = vadd.f32 %v4855_v53, %v1870_v58  ;;  %v3092_v12 = vld [vmem:[%s3428_s20 + $0xb0] sm:$0xff] }
 0x21d   : > { %1942 = vst.msk [vmem:[%s4873_s18 + $0x58] sm:$0xff] %vm393_vm0, %v1926_v62  ;;  %v1925_v22 = vadd.f32 %v1909_v61, %v1893_v29 }
 0x21f   : > { %1941 = vst.msk [vmem:[%s4873_s18 + $0x50] sm:$0xff] %vm393_vm0, %v1925_v22 }
 0x225   : > { %v3281_v21 = vpop.f32.mrf.mxu1 }
 0x226   : > { %v1873_v19 = vmul.f32 %v3281_v21, %v4842_v16  ;;  %v3095_v21 = vld [vmem:[%s3428_s20 + $0xc8] sm:$0xff] }
 0x227   : > { %v1834_v2 = vpop.f32.mrf.mxu1 }
 0x228   : > { %v1896_v56 = vadd.f32 %v4855_v53, %v1873_v19  ;;  %v1872_v50 = vmul.f32 %v4842_v16, %v1834_v2 }
 0x22a   : > { %v1928_v26 = vadd.f32 %v1912_v0, %v1896_v56  ;;  %v1895_v8 = vadd.f32 %v4855_v53, %v1872_v50  ;;  %v3094_v56 = vld [vmem:[%s3428_s20 + $0xc0] sm:$0xff] }
 0x22c   : > { %1944 = vst.msk [vmem:[%s4873_s18 + $0x68] sm:$0xff] %vm393_vm0, %v1928_v26  ;;  %v1927_v44 = vadd.f32 %v1911_v17, %v1895_v8 }
 0x22e   : > { %1943 = vst.msk [vmem:[%s4873_s18 + $0x60] sm:$0xff] %vm393_vm0, %v1927_v44 }
 0x230   : > { %v3284_v59 = vpop.f32.mrf.mxu1 }
 0x231   : > { %v1875_v52 = vmul.f32 %v3284_v59, %v4842_v16  ;;  %v3097_v59 = vld [vmem:[%s3428_s20 + $0xd8] sm:$0xff] }
 0x232   : > { %v1844_v34 = vpop.f32.mrf.mxu1 }
 0x233   : > { %v1898_v41 = vadd.f32 %v4855_v53, %v1875_v52  ;;  %v1874_v11 = vmul.f32 %v4842_v16, %v1844_v34 }
 0x235   : > { %v1930_v7 = vadd.f32 %v1914_v18, %v1898_v41  ;;  %v1897_v32 = vadd.f32 %v4855_v53, %v1874_v11  ;;  %v3096_v41 = vld [vmem:[%s3428_s20 + $0xd0] sm:$0xff] }
 0x237   : > { %1946 = vst.msk [vmem:[%s4873_s18 + $0x78] sm:$0xff] %vm393_vm0, %v1930_v7  ;;  %v1929_v33 = vadd.f32 %v1913_v4, %v1897_v32 }
 0x239   : > { %1945 = vst.msk [vmem:[%s4873_s18 + $0x70] sm:$0xff] %vm393_vm0, %v1929_v33 }
 0x241   : > { %v3299_v5 = vpop.f32.mrf.mxu1 }
 0x242   : > { %v2859_v25 = vmul.f32 %v3299_v5, %v4842_v16  ;;  %v3099_v5 = vld [vmem:[%s3428_s20 + $0xe8] sm:$0xff] }
 0x243   : > { %v2772_v38 = vpop.f32.mrf.mxu1 }
 0x244   : > { %v2882_v1 = vadd.f32 %v4855_v53, %v2859_v25  ;;  %v2858_v40 = vmul.f32 %v4842_v16, %v2772_v38 }
 0x246   : > { %v2915_v14 = vadd.f32 %v3087_v23, %v2882_v1  ;;  %v2881_v48 = vadd.f32 %v4855_v53, %v2858_v40  ;;  %v3098_v1 = vld [vmem:[%s3428_s20 + $0xe0] sm:$0xff] }
 0x248   : > { %3103 = vst.msk [vmem:[%s4873_s18 + $0x88] sm:$0xff] %vm393_vm0, %v2915_v14  ;;  %v2914_v30 = vadd.f32 %v3086_v9, %v2881_v48 }
 0x24a   : > { %3102 = vst.msk [vmem:[%s4873_s18 + $0x80] sm:$0xff] %vm393_vm0, %v2914_v30 }
 0x24b   : > { %v3302_v3 = vpop.f32.mrf.mxu1 }
 0x24c   : > { %v2861_v57 = vmul.f32 %v3302_v3, %v4842_v16  ;;  %v3101_v3 = vld [vmem:[%s3428_s20 + $0xf8] sm:$0xff] }
 0x24d   : > { %v2782_v63 = vpop.f32.mrf.mxu1 }
 0x24e   : > { %v2884_v37 = vadd.f32 %v4855_v53, %v2861_v57  ;;  %v2860_v28 = vmul.f32 %v4842_v16, %v2782_v63 }
 0x250   : > { %v2917_v45 = vadd.f32 %v3089_v20, %v2884_v37  ;;  %v2883_v54 = vadd.f32 %v4855_v53, %v2860_v28  ;;  %v3100_v37 = vld [vmem:[%s3428_s20 + $0xf0] sm:$0xff] }
 0x252   : > { %3105 = vst.msk [vmem:[%s4873_s18 + $0x98] sm:$0xff] %vm393_vm0, %v2917_v45  ;;  %v2916_v24 = vadd.f32 %v3088_v51, %v2883_v54 }
 0x254   : > { %3104 = vst.msk [vmem:[%s4873_s18 + $0x90] sm:$0xff] %vm393_vm0, %v2916_v24 }
 0x258   : > { %v3305_v55 = vpop.f32.mrf.mxu1 }
 0x259   : > { %v2863_v27 = vmul.f32 %v3305_v55, %v4842_v16 }
 0x25a   : > { %v2792_v39 = vpop.f32.mrf.mxu1 }
 0x25b   : > { %v2886_v43 = vadd.f32 %v4855_v53, %v2863_v27  ;;  %v2862_v10 = vmul.f32 %v4842_v16, %v2792_v39 }
 0x25d   : > { %v2919_v31 = vadd.f32 %v3091_v60, %v2886_v43  ;;  %v2885_v47 = vadd.f32 %v4855_v53, %v2862_v10 }
 0x25f   : > { %3107 = vst.msk [vmem:[%s4873_s18 + $0xa8] sm:$0xff] %vm393_vm0, %v2919_v31  ;;  %v2918_v13 = vadd.f32 %v3090_v36, %v2885_v47 }
 0x261   : > { %3106 = vst.msk [vmem:[%s4873_s18 + $0xa0] sm:$0xff] %vm393_vm0, %v2918_v13 }
 0x265   : > { %v3308_v15 = vpop.f32.mrf.mxu1 }
 0x266   : > { %v2865_v6 = vmul.f32 %v3308_v15, %v4842_v16 }
 0x267   : > { %v2802_v49 = vpop.f32.mrf.mxu1 }
 0x268   : > { %v2888_v42 = vadd.f32 %v4855_v53, %v2865_v6  ;;  %v2864_v46 = vmul.f32 %v4842_v16, %v2802_v49 }
 0x26a   : > { %v2921_v58 = vadd.f32 %v3093_v35, %v2888_v42  ;;  %v2887_v61 = vadd.f32 %v4855_v53, %v2864_v46 }
 0x26c   : > { %3109 = vst.msk [vmem:[%s4873_s18 + $0xb8] sm:$0xff] %vm393_vm0, %v2921_v58  ;;  %v2920_v62 = vadd.f32 %v3092_v12, %v2887_v61 }
 0x26e   : > { %3108 = vst.msk [vmem:[%s4873_s18 + $0xb0] sm:$0xff] %vm393_vm0, %v2920_v62 }
 0x272   : > { %v3311_v29 = vpop.f32.mrf.mxu1 }
 0x273   : > { %v2867_v22 = vmul.f32 %v3311_v29, %v4842_v16 }
 0x274   : > { %v2812_v19 = vpop.f32.mrf.mxu1 }
 0x275   : > { %v2890_v0 = vadd.f32 %v4855_v53, %v2867_v22  ;;  %v2866_v2 = vmul.f32 %v4842_v16, %v2812_v19 }
 0x277   : > { %v2923_v50 = vadd.f32 %v3095_v21, %v2890_v0  ;;  %v2889_v17 = vadd.f32 %v4855_v53, %v2866_v2 }
 0x279   : > { %3111 = vst.msk [vmem:[%s4873_s18 + $0xc8] sm:$0xff] %vm393_vm0, %v2923_v50  ;;  %v2922_v26 = vadd.f32 %v3094_v56, %v2889_v17 }
 0x27b   : > { %3110 = vst.msk [vmem:[%s4873_s18 + $0xc0] sm:$0xff] %vm393_vm0, %v2922_v26 }
 0x27f   : > { %v3314_v8 = vpop.f32.mrf.mxu1 }
 0x280   : > { %v2869_v44 = vmul.f32 %v3314_v8, %v4842_v16 }
 0x281   : > { %v2822_v52 = vpop.f32.mrf.mxu1 }
 0x282   : > { %v2892_v18 = vadd.f32 %v4855_v53, %v2869_v44  ;;  %v2868_v34 = vmul.f32 %v4842_v16, %v2822_v52 }
 0x284   : > { %v2925_v11 = vadd.f32 %v3097_v59, %v2892_v18  ;;  %v2891_v4 = vadd.f32 %v4855_v53, %v2868_v34 }
 0x286   : > { %3113 = vst.msk [vmem:[%s4873_s18 + $0xd8] sm:$0xff] %vm393_vm0, %v2925_v11  ;;  %v2924_v7 = vadd.f32 %v3096_v41, %v2891_v4 }
 0x288   : > { %3112 = vst.msk [vmem:[%s4873_s18 + $0xd0] sm:$0xff] %vm393_vm0, %v2924_v7 }
 0x28c   : > { %v3317_v32 = vpop.f32.mrf.mxu1 }
 0x28d   : > { %v2871_v33 = vmul.f32 %v3317_v32, %v4842_v16 }
 0x28e   : > { %v2832_v25 = vpop.f32.mrf.mxu1 }
 0x28f   : > { %v2894_v23 = vadd.f32 %v4855_v53, %v2871_v33  ;;  %v2870_v38 = vmul.f32 %v4842_v16, %v2832_v25 }
 0x291   : > { %v2927_v40 = vadd.f32 %v3099_v5, %v2894_v23  ;;  %v2893_v9 = vadd.f32 %v4855_v53, %v2870_v38 }
 0x293   : > { %3115 = vst.msk [vmem:[%s4873_s18 + $0xe8] sm:$0xff] %vm393_vm0, %v2927_v40  ;;  %v2926_v14 = vadd.f32 %v3098_v1, %v2893_v9 }
 0x295   : > { %3114 = vst.msk [vmem:[%s4873_s18 + $0xe0] sm:$0xff] %vm393_vm0, %v2926_v14 }
 0x299   : > { %v3320_v48 = vpop.f32.mrf.mxu1 }
 0x29a   : > { %v2873_v30 = vmul.f32 %v3320_v48, %v4842_v16 }
 0x29b   : > { %v2842_v57 = vpop.f32.mrf.mxu1 }
 0x29c   : > { %v2896_v20 = vadd.f32 %v4855_v53, %v2873_v30  ;;  %v2872_v63 = vmul.f32 %v4842_v16, %v2842_v57 }
 0x29e   : > { %v2929_v28 = vadd.f32 %v3101_v3, %v2896_v20  ;;  %v2895_v51 = vadd.f32 %v4855_v53, %v2872_v63 }
 0x2a0   : > { %3117 = vst.msk [vmem:[%s4873_s18 + $0xf8] sm:$0xff] %vm393_vm0, %v2929_v28  ;;  %v2928_v45 = vadd.f32 %v3100_v37, %v2895_v51 }
 0x2a2   : > { %3116 = vst.msk [vmem:[%s4873_s18 + $0xf0] sm:$0xff] %vm393_vm0, %v2928_v45 }
 0x2a3 PF: > { %s20_s13 = sadd.s32 1, %s3351_s13  }
 0x2a4   : > { %p17_p4 = scmp.ge.s32.totalorder %s20_s13, 4  }
 0x2a6   :  { %19 = sbr.rel (!%p17_p4) target bundleno = 1 (0x1), region = 98 }

</bundles_post_ra>
